<compile_context>
chip_gen: v7x
topology: tpu7x:2x2x1
jax: 0.10.0
libtpu: 0.0.40
codegen_flags: <defaults>
</compile_context>

<pallas_src>
import numpy as np
import jax
import jax.numpy as jnp
from jax import lax
from jax.experimental import pallas as pl
from jax.experimental.pallas import tpu as pltpu


# --------------------------------------------------------------------------- #
# Pallas kernel: one batch element per grid step (all heads/classes fused)
# --------------------------------------------------------------------------- #
def _robustquote_kernel(x_ref, q_ref, q02_ref, q04_ref, v_ref, wk_ref,
                        wproj_ref, b_ref, out_ref, attn_cls_ref, attn_ref):
    # x_ref        : (1, N, C)     bf16  activations for this batch element
    # q_ref        : (H*K, N, D)   bf16  anchor queries (scale folded), h-major
    # q02_ref      : (H, K, D)     bf16  query row 0 per (head, class)   [2D path]
    # q04_ref      : (H, K, 1, D)  bf16  same data, broadcast-friendly layout
    # v_ref        : (H*K, N, D)   bf16  anchor values, h-major
    # wk_ref       : (H, C, D)     bf16  k-projection, per-head slabs
    # wproj_ref    : (H, D, C)     bf16  output projection, per-head slabs
    # b_ref        : (1, C)        f32   projection bias
    # out_ref      : (1, N, C)           projected output
    # attn_cls_ref : (1, H, K)     f32   class-attention weights
    # attn_ref     : (1, H*K, N, N)      attention maps (h-major, k-minor)
    H = wk_ref.shape[0]
    HK, N, D = v_ref.shape
    K = HK // H
    C = x_ref.shape[2]
    f32 = jnp.float32
    bf16 = jnp.bfloat16

    x_b = x_ref[0]                                              # (N, C) bf16

    # ---- k projection, batched over heads (contraction = C; same FLOPs as the
    #      full (N,C)@(C,C) matmul, but lands directly in head-major layout) --
    x_bc = jnp.broadcast_to(x_b[None, :, :], (H, N, C))
    k_h = lax.dot_general(x_bc, wk_ref[...], (((2,), (1,)), ((0,), (0,))),
                          preferred_element_type=f32).astype(bf16)   # (H, N, D)

    # replicate keys across classes so scores / PV are single batched dots
    k_hk = jnp.broadcast_to(k_h[:, None, :, :], (H, K, N, D)).reshape(HK, N, D)

    # ---- scores for all (head, class) pairs at once ------------------------
    s = lax.dot_general(q_ref[...], k_hk, (((2,), (2,)), ((0,), (0,))),
                        preferred_element_type=f32)             # (HK, Nq, Nk)

    # softmax over keys (f32)
    s_max = jnp.max(s, axis=-1, keepdims=True)
    e = jnp.exp(s - s_max)
    p = e * pl.reciprocal(jnp.sum(e, axis=-1, keepdims=True), approx=True)

    # single contiguous store of all attention maps for this batch element
    attn_ref[0] = p.astype(attn_ref.dtype)                      # (HK, N, N)

    # ---- class logits: logit[h,k] = q[k,h,0,:] . k_x[h,0,:]  (== s[hk,0,0]) --
    k0 = k_h[:, 0:1, :].astype(f32)                             # (H, 1, D)
    # (a) 2D layout -> one dense write of attn_cls
    l2 = jnp.sum(q02_ref[...].astype(f32) * k0, axis=-1)        # (H, K)
    e2 = jnp.exp(l2 - jnp.max(l2, axis=-1, keepdims=True))
    attn_cls_ref[0] = e2 / jnp.sum(e2, axis=-1, keepdims=True)
    # (b) broadcast-friendly (H,K,1,1) layout used to weight the PV partials
    #     (recomputing these 12 length-D dot products is cheaper and safer than
    #      relayouting the (H,K) tile into per-block scalars)
    l4 = jnp.sum(q04_ref[...].astype(f32) * k0[:, None, :, :], axis=-1,
                 keepdims=True)                                 # (H, K, 1, 1)
    e4 = jnp.exp(l4 - jnp.max(l4, axis=1, keepdims=True))
    w4 = e4 / jnp.sum(e4, axis=1, keepdims=True)                # (H, K, 1, 1)

    # ---- PV (single batched dot), class weighting, class reduction ---------
    xo = lax.dot_general(p.astype(bf16), v_ref[...], (((2,), (1,)), ((0,), (0,))),
                         preferred_element_type=f32)            # (HK, N, D)
    xw = jnp.sum(xo.reshape(H, K, N, D) * w4, axis=1)           # (H, N, D) f32

    # ---- output projection with the head-concat folded in ------------------
    o_h = lax.dot_general(xw.astype(bf16), wproj_ref[...],
                          (((2,), (1,)), ((0,), (0,))),
                          preferred_element_type=f32)           # (H, N, C)
    out_ref[0] = (jnp.sum(o_h, axis=0) + b_ref[...]).astype(out_ref.dtype)


# --------------------------------------------------------------------------- #
# Wrapper
# --------------------------------------------------------------------------- #
def robustquote_attention(x, anchors, wqv, wk, wproj, bproj, num_heads,
                          attn_dtype=jnp.float32):
    """x: (B, N, C); anchors: (K, N, C).  Returns (out, attn_cls, attn)."""
    B, N, C = x.shape
    K = anchors.shape[0]
    H = num_heads
    D = C // H
    scale = float(D ** -0.5)
    bf16 = jnp.bfloat16

    # ---- batch-independent precompute (plain XLA, hoisted out of the grid) --
    qv = anchors.reshape(K * N, C) @ wqv.T                        # (K*N, 2C) f32
    q = (qv[:, :C] * scale).reshape(K, N, H, D)                   # scale folded into q
    v = qv[:, C:].reshape(K, N, H, D)
    q_hk = jnp.transpose(q, (2, 0, 1, 3)).reshape(H * K, N, D).astype(bf16)
    v_hk = jnp.transpose(v, (2, 0, 1, 3)).reshape(H * K, N, D).astype(bf16)
    # query row 0 per (head, class) for the class-logit path; sliced AFTER the
    # bf16 cast so logits match s[hk, 0, 0] up to accumulation order.  Two
    # layouts are passed so the kernel never has to relayout a tiny tensor.
    q0_2d = q_hk[:, 0, :].reshape(H, K, D)                        # (H, K, D)
    q0_4d = q_hk[:, 0:1, :].reshape(H, K, 1, D)                   # (H, K, 1, D)
    wk_heads = jnp.transpose(wk.T.reshape(C, H, D), (1, 0, 2)).astype(bf16)   # (H, C, D)
    wproj_heads = wproj.T.reshape(H, D, C).astype(bf16)                       # (H, D, C)
    bproj2 = bproj.reshape(1, C).astype(jnp.float32)
    x_bf = x.astype(bf16)

    out_shapes = (
        jax.ShapeDtypeStruct((B, N, C), x.dtype),                 # projected output
        jax.ShapeDtypeStruct((B, H, K), jnp.float32),             # attn_cls
        jax.ShapeDtypeStruct((B, H * K, N, N), attn_dtype),       # attention maps
    )

    grid_spec = pltpu.PrefetchScalarGridSpec(
        num_scalar_prefetch=0,
        grid=(B,),
        in_specs=[
            pl.BlockSpec((1, N, C), lambda b: (b, 0, 0)),             # x (per batch)
            pl.BlockSpec((H * K, N, D), lambda b: (0, 0, 0)),         # q (resident)
            pl.BlockSpec((H, K, D), lambda b: (0, 0, 0)),             # q0 2D (resident)
            pl.BlockSpec((H, K, 1, D), lambda b: (0, 0, 0, 0)),       # q0 4D (resident)
            pl.BlockSpec((H * K, N, D), lambda b: (0, 0, 0)),         # v (resident)
            pl.BlockSpec((H, C, D), lambda b: (0, 0, 0)),             # Wk (resident)
            pl.BlockSpec((H, D, C), lambda b: (0, 0, 0)),             # Wproj (resident)
            pl.BlockSpec((1, C), lambda b: (0, 0)),                   # bias (resident)
        ],
        out_specs=[
            pl.BlockSpec((1, N, C), lambda b: (b, 0, 0)),             # out
            pl.BlockSpec((1, H, K), lambda b: (b, 0, 0)),             # attn_cls
            pl.BlockSpec((1, H * K, N, N), lambda b: (b, 0, 0, 0)),   # attn maps
        ],
        scratch_shapes=[],
    )

    out, attn_cls, attn_hk = pl.pallas_call(
        _robustquote_kernel,
        out_shape=out_shapes,
        grid_spec=grid_spec,
        compiler_params=pltpu.CompilerParams(
            dimension_semantics=("parallel",)),
    )(x_bf, q_hk, q0_2d, q0_4d, v_hk, wk_heads, wproj_heads, bproj2)

    # (B, H*K, N, N) [h-major, k-minor] -> (K, B, H, N, N)
    attn = jnp.transpose(attn_hk.reshape(B, H, K, N, N), (2, 0, 1, 3, 4))
    return out, attn_cls, attn


# --------------------------------------------------------------------------- #
# Pure-JAX reference (mirrors the PyTorch forward exactly, f32)
# --------------------------------------------------------------------------- #
def robustquote_attention_ref(x, anchors, wqv, wk, wproj, bproj, num_heads):
    B, N, C = x.shape
    K = anchors.shape[0]
    H = num_heads
    D = C // H
    scale = D ** -0.5

    qv = anchors @ wqv.T                                             # (K, N, 2C)
    qv = qv.reshape(K, N, 2, H, D).transpose(2, 0, 3, 1, 4)           # (2, K, H, N, D)
    q, v = qv[0], qv[1]
    k = (x @ wk.T).reshape(B, N, H, D).transpose(0, 2, 1, 3)          # (B, H, N, D)

    attn = jnp.einsum('khnd,bhmd->kbhnm', q, k) * scale               # (K, B, H, N, N)
    attn_cls = jax.nn.softmax(
        jnp.transpose(attn[:, :, :, 0, 0], (1, 2, 0)), axis=-1)       # (B, H, K)
    attn_sm = jax.nn.softmax(attn, axis=-1)

    xo = jnp.einsum('kbhnm,khmd->kbhnd', attn_sm, v)                  # (K, B, H, N, D)
    xw = jnp.einsum('kbhnd,bhk->bhnd', xo, attn_cls)                  # (B, H, N, D)
    xw = jnp.transpose(xw, (0, 2, 1, 3)).reshape(B, N, C)
    out = xw @ wproj.T + bproj
    return out, attn_cls, attn_sm


def _rel_l2(a, b):
    a = np.asarray(a, dtype=np.float64)
    b = np.asarray(b, dtype=np.float64)
    return float(np.linalg.norm(a - b) / (np.linalg.norm(b) + 1e-12))


# --------------------------------------------------------------------------- #
# Main
# --------------------------------------------------------------------------- #
if __name__ == "__main__":
    B, N, C = 2, 8, 32
    NUM_HEADS = 4
    NUM_CLASSES = 3

    key = jax.random.PRNGKey(0)
    kx, ka, kqv, kk, kp, kb = jax.random.split(key, 6)

    x = jax.random.normal(kx, (B, N, C), dtype=jnp.float32)
    anchors = jax.random.normal(ka, (NUM_CLASSES, N, C), dtype=jnp.float32)

    # nn.Linear-style shapes: (out_features, in_features)
    w_scale = 1.0 / np.sqrt(C)
    wqv = jax.random.normal(kqv, (2 * C, C), dtype=jnp.float32) * w_scale
    wk = jax.random.normal(kk, (C, C), dtype=jnp.float32) * w_scale
    wproj = jax.random.normal(kp, (C, C), dtype=jnp.float32) * w_scale
    bproj = jax.random.normal(kb, (C,), dtype=jnp.float32) * 0.01

    out, attn_cls, attn = robustquote_attention(
        x, anchors, wqv, wk, wproj, bproj, NUM_HEADS)
    jax.block_until_ready((out, attn_cls, attn))

    # correctness vs. the plain-JAX f32 reference (kernel uses bf16 operands with
    # f32 accumulation, so compare with a relative-L2 criterion)
    out_r, attn_cls_r, attn_r = robustquote_attention_ref(
        x, anchors, wqv, wk, wproj, bproj, NUM_HEADS)

    assert out.shape == (B, N, C)
    assert attn_cls.shape == (B, NUM_HEADS, NUM_CLASSES)
    assert attn.shape == (NUM_CLASSES, B, NUM_HEADS, N, N)
    assert _rel_l2(out, out_r) < 5e-2, _rel_l2(out, out_r)
    assert _rel_l2(attn_cls, attn_cls_r) < 5e-2, _rel_l2(attn_cls, attn_cls_r)
    assert _rel_l2(attn, attn_r) < 5e-2, _rel_l2(attn, attn_r)

    print("KERNEL_OK")
</pallas_src>

<mosaic_0001>
module attributes {stable_mosaic.version = 11 : i64} {
  func.func @_robustquote_kernel(%arg0: i32, %arg1: memref<1x8x32xbf16, #tpu.memory_space<vmem>>, %arg2: memref<12x8x8xbf16, #tpu.memory_space<vmem>>, %arg3: memref<4x3x8xbf16, #tpu.memory_space<vmem>>, %arg4: memref<4x3x1x8xbf16, #tpu.memory_space<vmem>>, %arg5: memref<12x8x8xbf16, #tpu.memory_space<vmem>>, %arg6: memref<4x32x8xbf16, #tpu.memory_space<vmem>>, %arg7: memref<4x8x32xbf16, #tpu.memory_space<vmem>>, %arg8: memref<1x32xf32, #tpu.memory_space<vmem>>, %arg9: memref<1x8x32xf32, #tpu.memory_space<vmem>>, %arg10: memref<1x4x3xf32, #tpu.memory_space<vmem>>, %arg11: memref<1x12x8x8xf32, #tpu.memory_space<vmem>>) attributes {dimension_semantics = [#tpu.dimension_semantics<parallel>], iteration_bounds = array<i64: 2>, scalar_prefetch = 0 : i64, scratch_operands = 0 : i64, tpu.core_type = #tpu.core_type<tc>, window_params = [{transform_indices = @transform_0, window_bounds = array<i64: 1, 8, 32>}, {pipeline_mode = #tpu.pipeline_mode<synchronous>, transform_indices = @transform_1, window_bounds = array<i64: 12, 8, 8>}, {pipeline_mode = #tpu.pipeline_mode<synchronous>, transform_indices = @transform_2, window_bounds = array<i64: 4, 3, 8>}, {pipeline_mode = #tpu.pipeline_mode<synchronous>, transform_indices = @transform_3, window_bounds = array<i64: 4, 3, 1, 8>}, {pipeline_mode = #tpu.pipeline_mode<synchronous>, transform_indices = @transform_4, window_bounds = array<i64: 12, 8, 8>}, {pipeline_mode = #tpu.pipeline_mode<synchronous>, transform_indices = @transform_5, window_bounds = array<i64: 4, 32, 8>}, {pipeline_mode = #tpu.pipeline_mode<synchronous>, transform_indices = @transform_6, window_bounds = array<i64: 4, 8, 32>}, {pipeline_mode = #tpu.pipeline_mode<synchronous>, transform_indices = @transform_7, window_bounds = array<i64: 1, 32>}, {transform_indices = @transform_8, window_bounds = array<i64: 1, 8, 32>}, {transform_indices = @transform_9, window_bounds = array<i64: 1, 4, 3>}, {transform_indices = @transform_10, window_bounds = array<i64: 1, 12, 8, 8>}]} {
    %c0 = arith.constant 0 : index
    %c0_0 = arith.constant 0 : index
    %c0_1 = arith.constant 0 : index
    %0 = vector.load %arg1[%c0, %c0_0, %c0_1] : memref<1x8x32xbf16, #tpu.memory_space<vmem>>, vector<1x8x32xbf16>
    %1 = vector.shape_cast %0 : vector<1x8x32xbf16> to vector<8x32xbf16>
    %2 = vector.shape_cast %1 : vector<8x32xbf16> to vector<1x8x32xbf16>
    %3 = vector.shape_cast %2 : vector<1x8x32xbf16> to vector<1x8x32xbf16>
    %4 = vector.broadcast %3 : vector<1x8x32xbf16> to vector<4x8x32xbf16>
    %c0_2 = arith.constant 0 : index
    %c0_3 = arith.constant 0 : index
    %c0_4 = arith.constant 0 : index
    %5 = vector.load %arg6[%c0_2, %c0_3, %c0_4] : memref<4x32x8xbf16, #tpu.memory_space<vmem>>, vector<4x32x8xbf16>
    %cst = arith.constant dense<0.000000e+00> : vector<4x8x8xf32>
    %6 = tpu.matmul %4, %5, %cst {dimension_numbers = #tpu.dot_dimension_numbers<[2], [1], [1], [2], [0, 0, 0, 1, 1, 2], [0], [0]>} : vector<4x8x32xbf16>, vector<4x32x8xbf16>, vector<4x8x8xf32> -> vector<4x8x8xf32>
    %7 = arith.truncf %6 : vector<4x8x8xf32> to vector<4x8x8xbf16>
    %8 = vector.shape_cast %7 : vector<4x8x8xbf16> to vector<4x1x8x8xbf16>
    %9 = vector.shape_cast %8 : vector<4x1x8x8xbf16> to vector<4x1x8x8xbf16>
    %10 = vector.broadcast %9 : vector<4x1x8x8xbf16> to vector<4x3x8x8xbf16>
    %11 = vector.shape_cast %10 : vector<4x3x8x8xbf16> to vector<12x8x8xbf16>
    %c0_5 = arith.constant 0 : index
    %c0_6 = arith.constant 0 : index
    %c0_7 = arith.constant 0 : index
    %12 = vector.load %arg2[%c0_5, %c0_6, %c0_7] : memref<12x8x8xbf16, #tpu.memory_space<vmem>>, vector<12x8x8xbf16>
    %cst_8 = arith.constant dense<0.000000e+00> : vector<12x8x8xf32>
    %13 = tpu.matmul %12, %11, %cst_8 {dimension_numbers = #tpu.dot_dimension_numbers<[2], [2], [1], [1], [0, 0, 0, 1, 1, 1], [0], [0]>} : vector<12x8x8xbf16>, vector<12x8x8xbf16>, vector<12x8x8xf32> -> vector<12x8x8xf32>
    %cst_9 = arith.constant dense<0xFF800000> : vector<12x8xf32>
    %14 = vector.multi_reduction <maximumf>, %13, %cst_9 [2] : vector<12x8x8xf32> to vector<12x8xf32>
    %15 = vector.shape_cast %14 : vector<12x8xf32> to vector<12x8x1xf32>
    %16 = vector.broadcast %15 : vector<12x8x1xf32> to vector<12x8x8xf32>
    %17 = arith.subf %13, %16 : vector<12x8x8xf32>
    %18 = math.exp %17 : vector<12x8x8xf32>
    %cst_10 = arith.constant dense<0.000000e+00> : vector<12x8xf32>
    %19 = vector.multi_reduction <add>, %18, %cst_10 [2] : vector<12x8x8xf32> to vector<12x8xf32>
    %20 = vector.shape_cast %19 : vector<12x8xf32> to vector<12x8x1xf32>
    %21 = tpu.reciprocal %20 {approx = true} : vector<12x8x1xf32> -> vector<12x8x1xf32>
    %22 = vector.broadcast %21 : vector<12x8x1xf32> to vector<12x8x8xf32>
    %23 = arith.mulf %18, %22 : vector<12x8x8xf32>
    %c0_11 = arith.constant 0 : index
    %c0_12 = arith.constant 0 : index
    %c0_13 = arith.constant 0 : index
    %c0_14 = arith.constant 0 : index
    %24 = vector.load %arg11[%c0_11, %c0_12, %c0_13, %c0_14] : memref<1x12x8x8xf32, #tpu.memory_space<vmem>>, vector<1x12x8x8xf32>
    %25 = vector.shape_cast %24 : vector<1x12x8x8xf32> to vector<12x8x8xf32>
    %26 = vector.shape_cast %23 : vector<12x8x8xf32> to vector<1x12x8x8xf32>
    tpu.vector_store %arg11[%c0_11, %c0_12, %c0_13, %c0_14], %26 {strides = array<i32>} : memref<1x12x8x8xf32, #tpu.memory_space<vmem>>, vector<1x12x8x8xf32>,
    %27 = vector.extract_strided_slice %7 {offsets = [0, 0, 0], sizes = [4, 1, 8], strides = [1, 1, 1]} : vector<4x8x8xbf16> to vector<4x1x8xbf16>
    %28 = arith.extf %27 : vector<4x1x8xbf16> to vector<4x1x8xf32>
    %c0_15 = arith.constant 0 : index
    %c0_16 = arith.constant 0 : index
    %c0_17 = arith.constant 0 : index
    %29 = vector.load %arg3[%c0_15, %c0_16, %c0_17] : memref<4x3x8xbf16, #tpu.memory_space<vmem>>, vector<4x3x8xbf16>
    %30 = arith.extf %29 : vector<4x3x8xbf16> to vector<4x3x8xf32>
    %31 = vector.broadcast %28 : vector<4x1x8xf32> to vector<4x3x8xf32>
    %32 = arith.mulf %30, %31 : vector<4x3x8xf32>
    %cst_18 = arith.constant dense<0.000000e+00> : vector<4x3xf32>
    %33 = vector.multi_reduction <add>, %32, %cst_18 [2] : vector<4x3x8xf32> to vector<4x3xf32>
    %cst_19 = arith.constant dense<0xFF800000> : vector<4xf32>
    %34 = vector.multi_reduction <maximumf>, %33, %cst_19 [1] : vector<4x3xf32> to vector<4xf32>
    %35 = vector.shape_cast %34 : vector<4xf32> to vector<4x1xf32>
    %36 = vector.broadcast %35 : vector<4x1xf32> to vector<4x3xf32>
    %37 = arith.subf %33, %36 : vector<4x3xf32>
    %38 = math.exp %37 : vector<4x3xf32>
    %cst_20 = arith.constant dense<0.000000e+00> : vector<4xf32>
    %39 = vector.multi_reduction <add>, %38, %cst_20 [1] : vector<4x3xf32> to vector<4xf32>
    %40 = vector.shape_cast %39 : vector<4xf32> to vector<4x1xf32>
    %41 = vector.broadcast %40 : vector<4x1xf32> to vector<4x3xf32>
    %42 = arith.divf %38, %41 : vector<4x3xf32>
    %c0_21 = arith.constant 0 : index
    %c0_22 = arith.constant 0 : index
    %c0_23 = arith.constant 0 : index
    %43 = vector.load %arg10[%c0_21, %c0_22, %c0_23] : memref<1x4x3xf32, #tpu.memory_space<vmem>>, vector<1x4x3xf32>
    %44 = vector.shape_cast %43 : vector<1x4x3xf32> to vector<4x3xf32>
    %45 = vector.shape_cast %42 : vector<4x3xf32> to vector<1x4x3xf32>
    tpu.vector_store %arg10[%c0_21, %c0_22, %c0_23], %45 {strides = array<i32>} : memref<1x4x3xf32, #tpu.memory_space<vmem>>, vector<1x4x3xf32>,
    %c0_24 = arith.constant 0 : index
    %c0_25 = arith.constant 0 : index
    %c0_26 = arith.constant 0 : index
    %c0_27 = arith.constant 0 : index
    %46 = vector.load %arg4[%c0_24, %c0_25, %c0_26, %c0_27] : memref<4x3x1x8xbf16, #tpu.memory_space<vmem>>, vector<4x3x1x8xbf16>
    %47 = arith.extf %46 : vector<4x3x1x8xbf16> to vector<4x3x1x8xf32>
    %48 = vector.shape_cast %28 : vector<4x1x8xf32> to vector<4x1x1x8xf32>
    %49 = vector.broadcast %48 : vector<4x1x1x8xf32> to vector<4x3x1x8xf32>
    %50 = arith.mulf %47, %49 : vector<4x3x1x8xf32>
    %cst_28 = arith.constant dense<0.000000e+00> : vector<4x3x1xf32>
    %51 = vector.multi_reduction <add>, %50, %cst_28 [3] : vector<4x3x1x8xf32> to vector<4x3x1xf32>
    %52 = vector.shape_cast %51 : vector<4x3x1xf32> to vector<4x3x1x1xf32>
    %cst_29 = arith.constant dense<0xFF800000> : vector<4x1x1xf32>
    %53 = vector.multi_reduction <maximumf>, %52, %cst_29 [1] : vector<4x3x1x1xf32> to vector<4x1x1xf32>
    %54 = vector.shape_cast %53 : vector<4x1x1xf32> to vector<4x1x1x1xf32>
    %55 = vector.broadcast %54 : vector<4x1x1x1xf32> to vector<4x3x1x1xf32>
    %56 = arith.subf %52, %55 : vector<4x3x1x1xf32>
    %57 = math.exp %56 : vector<4x3x1x1xf32>
    %cst_30 = arith.constant dense<0.000000e+00> : vector<4x1x1xf32>
    %58 = vector.multi_reduction <add>, %57, %cst_30 [1] : vector<4x3x1x1xf32> to vector<4x1x1xf32>
    %59 = vector.shape_cast %58 : vector<4x1x1xf32> to vector<4x1x1x1xf32>
    %60 = vector.broadcast %59 : vector<4x1x1x1xf32> to vector<4x3x1x1xf32>
    %61 = arith.divf %57, %60 : vector<4x3x1x1xf32>
    %62 = arith.truncf %23 : vector<12x8x8xf32> to vector<12x8x8xbf16>
    %c0_31 = arith.constant 0 : index
    %c0_32 = arith.constant 0 : index
    %c0_33 = arith.constant 0 : index
    %63 = vector.load %arg5[%c0_31, %c0_32, %c0_33] : memref<12x8x8xbf16, #tpu.memory_space<vmem>>, vector<12x8x8xbf16>
    %cst_34 = arith.constant dense<0.000000e+00> : vector<12x8x8xf32>
    %64 = tpu.matmul %62, %63, %cst_34 {dimension_numbers = #tpu.dot_dimension_numbers<[2], [1], [1], [2], [0, 0, 0, 1, 1, 2], [0], [0]>} : vector<12x8x8xbf16>, vector<12x8x8xbf16>, vector<12x8x8xf32> -> vector<12x8x8xf32>
    %65 = vector.shape_cast %64 : vector<12x8x8xf32> to vector<4x3x8x8xf32>
    %66 = vector.broadcast %61 : vector<4x3x1x1xf32> to vector<4x3x8x8xf32>
    %67 = arith.mulf %65, %66 : vector<4x3x8x8xf32>
    %cst_35 = arith.constant dense<0.000000e+00> : vector<4x8x8xf32>
    %68 = vector.multi_reduction <add>, %67, %cst_35 [1] : vector<4x3x8x8xf32> to vector<4x8x8xf32>
    %69 = arith.truncf %68 : vector<4x8x8xf32> to vector<4x8x8xbf16>
    %c0_36 = arith.constant 0 : index
    %c0_37 = arith.constant 0 : index
    %c0_38 = arith.constant 0 : index
    %70 = vector.load %arg7[%c0_36, %c0_37, %c0_38] : memref<4x8x32xbf16, #tpu.memory_space<vmem>>, vector<4x8x32xbf16>
    %cst_39 = arith.constant dense<0.000000e+00> : vector<4x8x32xf32>
    %71 = tpu.matmul %69, %70, %cst_39 {dimension_numbers = #tpu.dot_dimension_numbers<[2], [1], [1], [2], [0, 0, 0, 1, 1, 2], [0], [0]>} : vector<4x8x8xbf16>, vector<4x8x32xbf16>, vector<4x8x32xf32> -> vector<4x8x32xf32>
    %cst_40 = arith.constant dense<0.000000e+00> : vector<8x32xf32>
    %72 = vector.multi_reduction <add>, %71, %cst_40 [0] : vector<4x8x32xf32> to vector<8x32xf32>
    %c0_41 = arith.constant 0 : index
    %c0_42 = arith.constant 0 : index
    %73 = vector.load %arg8[%c0_41, %c0_42] : memref<1x32xf32, #tpu.memory_space<vmem>>, vector<1x32xf32>
    %74 = vector.broadcast %73 : vector<1x32xf32> to vector<8x32xf32>
    %75 = arith.addf %72, %74 : vector<8x32xf32>
    %c0_43 = arith.constant 0 : index
    %c0_44 = arith.constant 0 : index
    %c0_45 = arith.constant 0 : index
    %76 = vector.load %arg9[%c0_43, %c0_44, %c0_45] : memref<1x8x32xf32, #tpu.memory_space<vmem>>, vector<1x8x32xf32>
    %77 = vector.shape_cast %76 : vector<1x8x32xf32> to vector<8x32xf32>
    %78 = vector.shape_cast %75 : vector<8x32xf32> to vector<1x8x32xf32>
    tpu.vector_store %arg9[%c0_43, %c0_44, %c0_45], %78 {strides = array<i32>} : memref<1x8x32xf32, #tpu.memory_space<vmem>>, vector<1x8x32xf32>,
    return
  }
  func.func @transform_0(%arg0: i32) -> (i32, i32, i32) {
    %c0_i32 = arith.constant 0 : i32
    %c0_i32_0 = arith.constant 0 : i32
    %c0_i32_1 = arith.constant 0 : i32
    return %arg0, %c0_i32, %c0_i32_0 : i32, i32, i32
  }
  func.func @transform_1(%arg0: i32) -> (i32, i32, i32) {
    %c0_i32 = arith.constant 0 : i32
    %c0_i32_0 = arith.constant 0 : i32
    %c0_i32_1 = arith.constant 0 : i32
    %c0_i32_2 = arith.constant 0 : i32
    return %c0_i32, %c0_i32_0, %c0_i32_1 : i32, i32, i32
  }
  func.func @transform_2(%arg0: i32) -> (i32, i32, i32) {
    %c0_i32 = arith.constant 0 : i32
    %c0_i32_0 = arith.constant 0 : i32
    %c0_i32_1 = arith.constant 0 : i32
    %c0_i32_2 = arith.constant 0 : i32
    return %c0_i32, %c0_i32_0, %c0_i32_1 : i32, i32, i32
  }
  func.func @transform_3(%arg0: i32) -> (i32, i32, i32, i32) {
    %c0_i32 = arith.constant 0 : i32
    %c0_i32_0 = arith.constant 0 : i32
    %c0_i32_1 = arith.constant 0 : i32
    %c0_i32_2 = arith.constant 0 : i32
    %c0_i32_3 = arith.constant 0 : i32
    return %c0_i32, %c0_i32_0, %c0_i32_1, %c0_i32_2 : i32, i32, i32, i32
  }
  func.func @transform_4(%arg0: i32) -> (i32, i32, i32) {
    %c0_i32 = arith.constant 0 : i32
    %c0_i32_0 = arith.constant 0 : i32
    %c0_i32_1 = arith.constant 0 : i32
    %c0_i32_2 = arith.constant 0 : i32
    return %c0_i32, %c0_i32_0, %c0_i32_1 : i32, i32, i32
  }
  func.func @transform_5(%arg0: i32) -> (i32, i32, i32) {
    %c0_i32 = arith.constant 0 : i32
    %c0_i32_0 = arith.constant 0 : i32
    %c0_i32_1 = arith.constant 0 : i32
    %c0_i32_2 = arith.constant 0 : i32
    return %c0_i32, %c0_i32_0, %c0_i32_1 : i32, i32, i32
  }
  func.func @transform_6(%arg0: i32) -> (i32, i32, i32) {
    %c0_i32 = arith.constant 0 : i32
    %c0_i32_0 = arith.constant 0 : i32
    %c0_i32_1 = arith.constant 0 : i32
    %c0_i32_2 = arith.constant 0 : i32
    return %c0_i32, %c0_i32_0, %c0_i32_1 : i32, i32, i32
  }
  func.func @transform_7(%arg0: i32) -> (i32, i32) {
    %c0_i32 = arith.constant 0 : i32
    %c0_i32_0 = arith.constant 0 : i32
    %c0_i32_1 = arith.constant 0 : i32
    return %c0_i32, %c0_i32_0 : i32, i32
  }
  func.func @transform_8(%arg0: i32) -> (i32, i32, i32) {
    %c0_i32 = arith.constant 0 : i32
    %c0_i32_0 = arith.constant 0 : i32
    %c0_i32_1 = arith.constant 0 : i32
    return %arg0, %c0_i32, %c0_i32_0 : i32, i32, i32
  }
  func.func @transform_9(%arg0: i32) -> (i32, i32, i32) {
    %c0_i32 = arith.constant 0 : i32
    %c0_i32_0 = arith.constant 0 : i32
    %c0_i32_1 = arith.constant 0 : i32
    return %arg0, %c0_i32, %c0_i32_0 : i32, i32, i32
  }
  func.func @transform_10(%arg0: i32) -> (i32, i32, i32, i32) {
    %c0_i32 = arith.constant 0 : i32
    %c0_i32_0 = arith.constant 0 : i32
    %c0_i32_1 = arith.constant 0 : i32
    %c0_i32_2 = arith.constant 0 : i32
    return %arg0, %c0_i32, %c0_i32_0, %c0_i32_1 : i32, i32, i32, i32
  }
}

</mosaic_0001>

<bundles_post_ra>
// kernel: tpu_custom_call.1
= control target key start
LH: loop header
LB: loop body
LE: loop exit
PB: predicated region body
PF: predicated region fallthrough
CT: control target
= control target key end

     0   :  { %s4092_s0 = inlined_call_operand.vmem [shape: bf16[2,8,32], index: 0, kind: input, shape index: {}]   ;;  %s4093_s1 = inlined_call_operand.vmem [shape: bf16[12,8,8], index: 1, kind: input, shape index: {}]   ;;  %s4094_s2 = inlined_call_operand.vmem [shape: bf16[4,3,8], index: 2, kind: input, shape index: {}]   ;;  %s4095_s3 = inlined_call_operand.vmem [shape: bf16[4,3,1,8], index: 3, kind: input, shape index: {}]   ;;  %s4096_s4 = inlined_call_operand.vmem [shape: bf16[12,8,8], index: 4, kind: input, shape index: {}]   ;;  %s4097_s5 = inlined_call_operand.vmem [shape: bf16[4,32,8], index: 5, kind: input, shape index: {}]   ;;  %s4098_s6 = inlined_call_operand.vmem [shape: bf16[4,8,32], index: 6, kind: input, shape index: {}]   ;;  %s4099_s7 = inlined_call_operand.vmem [shape: f32[1,32], index: 7, kind: input, shape index: {}]   ;;  %s4100_s8 = inlined_call_operand.hbm [shape: f32[2,8,32], index: 8, kind: output, shape index: {0}]   ;;  %s4101_s9 = inlined_call_operand.vmem [shape: f32[2,4,3], index: 9, kind: output, shape index: {1}]   ;;  %s4102_s10 = inlined_call_operand.vmem [shape: f32[2,12,8,8], index: 10, kind: output, shape index: {2}]  }
   0x1   :  { %4104 = sst [smem:[#allocation5_spill]] %s4092_s0 }
   0x2   :  { %4105 = sst [smem:[#allocation6_spill]] %s4093_s1 }
   0x3   :  { %16 = vsyncpa [#allocation3], 0 }
   0x4   :  { %18 = vsyncpa [#allocation3 + $0x1], 0  ;;  %s3274_s13 = smov 0   ;;  %s3276_s14 = smov 0  }
   0x5   :  { %s3278_s15 = smov 0   ;;  %s3280_s16 = smov 0  }
   0x6 LB: > { %s3295_s17 = sadd.s32 4294967295, %s3213_s16   ;;  %s2681_s18 = sadd.s32 4294967294, %s3213_s16   ;;  %s3213_s16 = sphi %s3280_s16, %s4114_s16   ;;  %s3209_s15 = sphi %s3278_s15, %s4113_s15   ;;  %s3205_s14 = sphi %s3276_s14, %s4112_s14   ;;  %s3201_s13 = sphi %s3274_s13, %s4111_s13  }
   0x7   : > { %s3299_s19 = sadd.s32 1, %s3213_s16   ;;  %s204_s20 = sadd.s32 1, %s3209_s15 }
   0x8   : > { %s201_s21 = ssub.s32 %s3213_s16, %s3299_s19  ;;  %p214_p0 = scmp.ne.s32.totalorder %s3209_s15, %s3205_s14 }
   0x9   : > { %p202_p1 = scmp.eq.s32.totalorder %s201_s21, 0  ;;  %p215_p2 = scmp.eq.s32.totalorder %s3295_s17, 1 }
   0xa   : > { %p220_p3 = scmp.ne.s32.totalorder %s3205_s14, %s3201_s13  ;;  %p221_p4 = scmp.eq.s32.totalorder %s2681_s18, 1 }
   0xb   : > { %s3310_s22 = scalar_select %p202_p1, %s3209_s15, %s204_s20  }
   0xc   : > { %p3312_p5 = por %p215_p2, %p214_p0  ;;  %p3316_p6 = por %p221_p4, %p220_p3 }
   0xd   : > { %p2684_p7 = scmp.ge.s32.totalorder %s3213_s16, 1  ;;  %p319_p8 = scmp.lt.s32.totalorder %s3213_s16, 3 }
   0xf   : > { %p320_p9 = pnand %p2684_p7, %p319_p8 }
  0x10   : > { %v3047_v0 = vld [vmem:[%s4097_s5] sm:$0xff] (!%p320_p9)   ;;  %v3215_v1 = vmov (!%p320_p9), 0.0   ;;  %v3048_v2 = vld [vmem:[%s4097_s5 + $0x8] sm:$0xff] (!%p320_p9)   ;;  %vm3216_vm0 = vmmov (!%p320_p9), 0   ;;  %v3049_v3 = vld [vmem:[%s4097_s5 + $0x10] sm:$0xff] (!%p320_p9)   ;;  %p365_p10 = scmp.lt.s32.totalorder (!%p320_p9), %s3295_s17, 1 }
  0x11   : > { %323 = sbr.rel (%p320_p9) target bundleno = 1418 (0x58a), region = 52  ;;  %2802 = vmatprep.subr.bf16.mxu0 (!%p320_p9), %v3215_v1  ;;  %2810 = vmatprep.subr.bf16.mxu1 (!%p320_p9), %v3215_v1  ;;  %v3050_v4 = vld [vmem:[%s4097_s5 + $0x18] sm:$0xff] (!%p320_p9)   ;;  %vm408_vm1 = vcmask (!%p320_p9), 261120   ;;  %v3051_v5 = vld [vmem:[%s4097_s5 + $0x20] sm:$0xff] (!%p320_p9)   ;;  %s4108_s0 = sld [smem:[#allocation5_spill]] (!%p320_p9)  ;;  %v3053_v7 = vld [vmem:[%s4097_s5 + $0x30] sm:$0xff] (!%p320_p9)  }
  0x12   : > { %2803 = vmatpush3.bf16.msra.mxu0 (!%p320_p9), %v3047_v0  ;;  %2806 = vmatprep.mubr.msk.bf16.mxu0 (!%p320_p9), %vm3216_vm0, %v3215_v1  ;;  %v3052_v8 = vld [vmem:[%s4097_s5 + $0x28] sm:$0xff] (!%p320_p9)   ;;  %v3054_v9 = vld [vmem:[%s4097_s5 + $0x38] sm:$0xff] (!%p320_p9)   ;;  %vm624_vm2 = vcmask (!%p320_p9), 64512   ;;  %s4109_s1 = sld [smem:[#allocation6_spill]] (!%p320_p9)  ;;  %vm1706_vm3 = vcmask (!%p320_p9), 1043456   ;;  %vm1329_vm4 = vcmask (!%p320_p9), 59392  }
  0x13   : > { %2804 = vmatprep.subr.bf16.mxu0 (!%p320_p9), %v3215_v1  ;;  %2814 = vmatprep.mubr.msk.bf16.mxu1 (!%p320_p9), %vm3216_vm0, %v3215_v1  ;;  %vm1549_vm5 = vcmask (!%p320_p9), 57344   ;;  %vm1364_vm6 = vcmask (!%p320_p9), 1041409   ;;  %vm1366_vm7 = vcmask (!%p320_p9), 1042434   ;;  %vm1368_vm8 = vcmask (!%p320_p9), 1043459   ;;  %s349_s30 = sand.u32 (!%p320_p9), 1, %s3205_s14   ;;  %s2731_s25 = sshll.u32 (!%p320_p9), %s3295_s17, 7 }
  0x14   : > { %2811 = vmatpush3.bf16.msra.mxu1 (!%p320_p9), %v3049_v3  ;;  %vm1371_vm9 = vcmask (!%p320_p9), 19456   ;;  %vm1586_vm10 = vcmask (!%p320_p9), 1040384   ;;  %s4018_s12 = sshll.u32 (!%p320_p9), %s349_s30, 3  ;;  %s4041_s29 = scalar_lea.hbm (!%p320_p9), %s4100_s8, %s2731_s25 }
  0x15   : > { %2812 = vmatprep.subr.bf16.mxu1 (!%p320_p9), %v3215_v1  ;;  %s351_s21 = scalar_lea.vmem (!%p320_p9), [#allocation2], %s4018_s12 }
  0x16   : > { %2805 = vmatpush3.bf16.msra.mxu0 (!%p320_p9), %v3048_v2  ;;  %s2567_s12 = sshll.u32 (!%p320_p9), %s351_s21, 4  ;;  %s2568_s12 = int_to_ptr.vmem [resolvable:$true] %s2567_s12 }
  0x17   : > { %2818 = vmatprep.subr.bf16.mxu0 (!%p320_p9), %v3215_v1 }
  0x18   : > { %s3340_s11 = scalar_select %p365_p10, %s3295_s17, 1  ;;  %2813 = vmatpush3.bf16.msra.mxu1 %v3050_v4  ;;  %v612_v21 = vld [vmem:[%s4109_s1] sm:$0xf]  ;;  %v613_v22 = vld [vmem:[%s4109_s1 + $0x4] sm:$0xf] }
  0x19   : > { %2826 = vmatprep.subr.bf16.mxu1 %v3215_v1  ;;  %v614_v32 = vld [vmem:[%s4109_s1 + $0x8] sm:$0xf]  ;;  %v615_v33 = vld [vmem:[%s4109_s1 + $0xc] sm:$0xf]  ;;  %v616_v35 = vld [vmem:[%s4109_s1 + $0x10] sm:$0xf] }
  0x1a   : > { %s4103_s20 = sshll.u32 %s3340_s11, 2  ;;  %v617_v36 = vld [vmem:[%s4109_s1 + $0x14] sm:$0xf]  ;;  %v618_v39 = vld [vmem:[%s4109_s1 + $0x18] sm:$0xf]  ;;  %s3002_s18 = smul.u32 96, %s3340_s11 }
  0x1b   : > { %s368_s28 = scalar_lea.vmem %s4108_s0, %s4103_s20  ;;  %v619_v40 = vld [vmem:[%s4109_s1 + $0x1c] sm:$0xf]  ;;  %v620_v42 = vld [vmem:[%s4109_s1 + $0x20] sm:$0xf]  ;;  %v621_v43 = vld [vmem:[%s4109_s1 + $0x24] sm:$0xf] }
  0x1c   : > { %v379_v6 = vld [vmem:[%s368_s28] sm:$0xf]  ;;  %v622_v44 = vld [vmem:[%s4109_s1 + $0x28] sm:$0xf]  ;;  %v623_v45 = vld [vmem:[%s4109_s1 + $0x2c] sm:$0xf]  ;;  %s3700_s26 = scalar_lea.vmem %s4102_s10, %s3002_s18 }
  0x1d   : > { %2807 = vmatmul.mubr.msk.bf16.vlgmr.msra.gmra.mrb[0].mxu0 %vm408_vm1, %v379_v6  ;;  %2815 = vmatmul.mubr.msk.bf16.vlgmr.msra.gmra.mrb[0].mxu1 %vm408_vm1, %v379_v6  ;;  %s2545_s18 = scalar_lea.sflag [#allocation3], %s349_s30  ;;  %s3218_s20 = smov [#allocation2]  }
  0x1e   : > { %2819 = vmatpush3.bf16.msra.mxu0 %v3051_v5  ;;  %2822 = vmatprep.mubr.msk.bf16.mxu0 %vm3216_vm0, %v3215_v1  ;;  %s3155_s0 = sshll.u32 %s3218_s20, 4  ;;  %s3156_s0 = int_to_ptr.vmem [resolvable:$false] %s3155_s0 }
  0x1f   : > { %2820 = vmatprep.subr.bf16.mxu0 %v3215_v1  ;;  %2827 = vmatpush3.bf16.msra.mxu1 %v3053_v7  ;;  %s3157_s1 = scalar_lea.vmem %s3156_s0, 256  ;;  %p3158_p0 = scmp.lt.s32.totalorder %s2568_s12, %s3156_s0 }
  0x20   : > { %2830 = vmatprep.mubr.msk.bf16.mxu1 %vm3216_vm0, %v3215_v1  ;;  %2828 = vmatprep.subr.bf16.mxu1 %v3215_v1 }
  0x22   : > { %2821 = vmatpush3.bf16.msra.mxu0 %v3052_v8 }
  0x23   : > { %2834 = vmatprep.subr.bf16.mxu0 %v3215_v1  ;;  %2829 = vmatpush3.bf16.msra.mxu1 %v3054_v9 }
  0x24   : > { %2840 = vmatprep.subr.bf16.mxu1 %v3215_v1 }
  0x25   : > { %2823 = vmatmul.mubr.msk.bf16.vlgmr.msra.gmra.mrb[4].mxu0 %vm408_vm1, %v379_v6 }
  0x26   : > { %2836 = vmatprep.mubr.msk.bf16.mxu0 %vm3216_vm0, %v3215_v1  ;;  %2831 = vmatmul.mubr.msk.bf16.vlgmr.msra.gmra.mrb[4].mxu1 %vm408_vm1, %v379_v6 }
  0x27   : > { %2842 = vmatprep.mubr.msk.bf16.mxu1 %vm3216_vm0, %v3215_v1 }
  0xf0   : > { %v446_v10 = vpop.f32.mrb[0].mxu0  ;;  %v498_v14 = vpop.f32.mrb[0].mxu1 }
  0xf1   : > { %v3382_v11 = vpack.c.bf16 %v446_v10, %v446_v10  ;;  %v2808_v12 = vpop.f32.mrb[1].mxu0  ;;  %v2816_v17 = vpop.f32.mrb[1].mxu1  ;;  %v3386_v19 = vpack.c.bf16 %v498_v14, %v498_v14 }
  0xf2   : > { %v449_v13 = vpop.f32.mrb[2].mxu0  ;;  %v501_v18 = vpop.f32.mrb[2].mxu1 }
  0xf3   : > { %v629_v15 = vsel %vm624_vm2, %v3382_v11, 0  ;;  %v2809_v16 = vpop.f32.mrb[3].mxu0  ;;  %v2817_v20 = vpop.f32.mrb[3].mxu1  ;;  %v761_v24 = vsel %vm624_vm2, %v3386_v19, 0 }
  0xf4   : > { %2835 = vmatpush3.bf16.xpose.msra.mxu0 %v629_v15  ;;  %2841 = vmatpush3.bf16.xpose.msra.mxu1 %v629_v15 }
  0xf5   : > { %2846 = vmatprep.subr.bf16.mxu0 %v3215_v1  ;;  %2852 = vmatprep.subr.bf16.mxu1 %v3215_v1 }
  0xf8   : > { %v550_v23 = vpop.f32.mrb[4].mxu0 }
  0xf9   : > { %v2824_v25 = vpop.f32.mrb[5].mxu0  ;;  %v602_v27 = vpop.f32.mrb[4].mxu1  ;;  %v3414_v34 = vpack.c.bf16 %v550_v23, %v550_v23 }
  0xfa   : > { %v553_v26 = vpop.f32.mrb[6].mxu0  ;;  %v2832_v29 = vpop.f32.mrb[5].mxu1  ;;  %v3432_v38 = vpack.c.bf16 %v602_v27, %v602_v27 }
  0xfb   : > { %2837 = vmatmul.mubr.msk.bf16.vlgmr.msra.gmra.mrb[8].mxu0 %vm624_vm2, %v612_v21  ;;  %2843 = vmatmul.mubr.msk.bf16.vlgmr.msra.gmra.mrb[8].mxu1 %vm624_vm2, %v613_v22  ;;  %v2825_v28 = vpop.f32.mrb[7].mxu0  ;;  %v605_v30 = vpop.f32.mrb[6].mxu1  ;;  %v893_v37 = vsel %vm624_vm2, %v3414_v34, 0 }
  0xfc   : > { %2847 = vmatpush3.bf16.xpose.msra.mxu0 %v629_v15  ;;  %2853 = vmatpush3.bf16.xpose.msra.mxu1 %v761_v24  ;;  %v2833_v31 = vpop.f32.mrb[7].mxu1  ;;  %v1025_v41 = vsel %vm624_vm2, %v3432_v38, 0 }
  0xfd   : > { %2848 = vmatprep.mubr.msk.bf16.mxu0 %vm3216_vm0, %v3215_v1  ;;  %2854 = vmatprep.mubr.msk.bf16.mxu1 %vm3216_vm0, %v3215_v1 }
  0xfe   : > { %2858 = vmatprep.subr.bf16.mxu0 %v3215_v1  ;;  %2864 = vmatprep.subr.bf16.mxu1 %v3215_v1 }
 0x103   : > { %2849 = vmatmul.mubr.msk.bf16.vlgmr.msra.gmra.mrb[12].mxu0 %vm624_vm2, %v614_v32  ;;  %2855 = vmatmul.mubr.msk.bf16.vlgmr.msra.gmra.mrb[12].mxu1 %vm624_vm2, %v615_v33 }
 0x104   : > { %2859 = vmatpush3.bf16.xpose.msra.mxu0 %v761_v24  ;;  %2865 = vmatpush3.bf16.xpose.msra.mxu1 %v761_v24 }
 0x105   : > { %2860 = vmatprep.mubr.msk.bf16.mxu0 %vm3216_vm0, %v3215_v1  ;;  %2866 = vmatprep.mubr.msk.bf16.mxu1 %vm3216_vm0, %v3215_v1 }
 0x106   : > { %2870 = vmatprep.subr.bf16.mxu0 %v3215_v1  ;;  %2876 = vmatprep.subr.bf16.mxu1 %v3215_v1 }
 0x10b   : > { %2861 = vmatmul.mubr.msk.bf16.vlgmr.msra.gmra.mrb[16].mxu0 %vm624_vm2, %v616_v35  ;;  %2867 = vmatmul.mubr.msk.bf16.vlgmr.msra.gmra.mrb[16].mxu1 %vm624_vm2, %v617_v36 }
 0x10c   : > { %2871 = vmatpush3.bf16.xpose.msra.mxu0 %v893_v37  ;;  %2877 = vmatpush3.bf16.xpose.msra.mxu1 %v893_v37 }
 0x10d   : > { %2872 = vmatprep.mubr.msk.bf16.mxu0 %vm3216_vm0, %v3215_v1  ;;  %2878 = vmatprep.mubr.msk.bf16.mxu1 %vm3216_vm0, %v3215_v1 }
 0x10e   : > { %2882 = vmatprep.subr.bf16.mxu0 %v3215_v1  ;;  %2888 = vmatprep.subr.bf16.mxu1 %v3215_v1 }
 0x113   : > { %2873 = vmatmul.mubr.msk.bf16.vlgmr.msra.gmra.mrb[20].mxu0 %vm624_vm2, %v618_v39  ;;  %2879 = vmatmul.mubr.msk.bf16.vlgmr.msra.gmra.mrb[20].mxu1 %vm624_vm2, %v619_v40 }
 0x114   : > { %2883 = vmatpush3.bf16.xpose.msra.mxu0 %v893_v37  ;;  %2889 = vmatpush3.bf16.xpose.msra.mxu1 %v1025_v41 }
 0x115   : > { %2884 = vmatprep.mubr.msk.bf16.mxu0 %vm3216_vm0, %v3215_v1  ;;  %2890 = vmatprep.mubr.msk.bf16.mxu1 %vm3216_vm0, %v3215_v1 }
 0x116   : > { %2894 = vmatprep.subr.bf16.mxu0 %v3215_v1  ;;  %2900 = vmatprep.subr.bf16.mxu1 %v3215_v1 }
 0x11b   : > { %2885 = vmatmul.mubr.msk.bf16.vlgmr.msra.gmra.mrb[24].mxu0 %vm624_vm2, %v620_v42  ;;  %2891 = vmatmul.mubr.msk.bf16.vlgmr.msra.gmra.mrb[24].mxu1 %vm624_vm2, %v621_v43 }
 0x11c   : > { %2895 = vmatpush3.bf16.xpose.msra.mxu0 %v1025_v41  ;;  %2901 = vmatpush3.bf16.xpose.msra.mxu1 %v1025_v41 }
 0x11d   : > { %2896 = vmatprep.mubr.msk.bf16.mxu0 %vm3216_vm0, %v3215_v1  ;;  %2902 = vmatprep.mubr.msk.bf16.mxu1 %vm3216_vm0, %v3215_v1 }
 0x11e   : > { %2906 = vmatprep.subr.bf16.mxu0 %v3215_v1  ;;  %2912 = vmatprep.subr.bf16.mxu1 %v3215_v1 }
 0x123   : > { %2897 = vmatmul.mubr.msk.bf16.vlgmr.msra.gmra.mrb[28].mxu0 %vm624_vm2, %v622_v44  ;;  %2903 = vmatmul.mubr.msk.bf16.vlgmr.msra.gmra.mrb[28].mxu1 %vm624_vm2, %v623_v45 }
 0x124   : > { %2908 = vmatprep.mubr.msk.bf16.mxu0 %vm3216_vm0, %v3215_v1  ;;  %2914 = vmatprep.mubr.msk.bf16.mxu1 %vm3216_vm0, %v3215_v1 }
 0x1ce   : > { %v3482_v46 = vpop.f32.mrb[8].mxu0  ;;  %v3484_v47 = vpop.f32.mrb[8].mxu1 }
 0x1cf   : > { %v2838_v48 = vpop.f32.mrb[9].mxu0  ;;  %v2844_v49 = vpop.f32.mrb[9].mxu1  ;;  %v1153_v50 = vsel %vm624_vm2, %v3482_v46, -inf  ;;  %v1156_v55 = vsel %vm624_vm2, %v3484_v47, -inf }
 0x1d0   : > { %v711_v51 = vpop.f32.mrb[10].mxu1  ;;  %1154 = vmax.xlane.f32.xlu0 %v1153_v50  ;;  %v668_v52 = vpop.f32.mrb[10].mxu0 }
 0x1d1   : > { %v2839_v53 = vpop.f32.mrb[11].mxu0  ;;  %v2845_v54 = vpop.f32.mrb[11].mxu1 }
 0x1d4   : > { %1157 = vmax.xlane.f32.xlu0 %v1156_v55 }
 0x1d6   : > { %v3490_v56 = vpop.f32.mrb[12].mxu0  ;;  %v3492_v57 = vpop.f32.mrb[12].mxu1 }
 0x1d7   : > { %v2850_v58 = vpop.f32.mrb[13].mxu0  ;;  %v2856_v59 = vpop.f32.mrb[13].mxu1  ;;  %v1159_v60 = vsel %vm624_vm2, %v3490_v56, -inf  ;;  %v1162_v2 = vsel %vm624_vm2, %v3492_v57, -inf }
 0x1d8   : > { %v800_v61 = vpop.f32.mrb[14].mxu1  ;;  %1160 = vmax.xlane.f32.xlu1 %v1159_v60  ;;  %v754_v62 = vpop.f32.mrb[14].mxu0 }
 0x1d9   : > { %v2851_v63 = vpop.f32.mrb[15].mxu0  ;;  %v2857_v0 = vpop.f32.mrb[15].mxu1 }
 0x1dc   : > { %1163 = vmax.xlane.f32.xlu1 %v1162_v2 }
 0x1de   : > { %v3498_v3 = vpop.f32.mrb[16].mxu0  ;;  %v3500_v4 = vpop.f32.mrb[16].mxu1 }
 0x1df   : > { %v2862_v5 = vpop.f32.mrb[17].mxu0  ;;  %v2868_v6 = vpop.f32.mrb[17].mxu1  ;;  %v1168_v7 = vsel %vm624_vm2, %v3500_v4, -inf  ;;  %v1165_v8 = vsel %vm624_vm2, %v3498_v3, -inf }
 0x1e0   : > { %v886_v9 = vpop.f32.mrb[18].mxu1  ;;  %1169 = vmax.xlane.f32.xlu1 %v1168_v7  ;;  %1166 = vmax.xlane.f32.xlu0 %v1165_v8  ;;  %v843_v10 = vpop.f32.mrb[18].mxu0 }
 0x1e1   : > { %v2863_v12 = vpop.f32.mrb[19].mxu0  ;;  %v2869_v13 = vpop.f32.mrb[19].mxu1 }
 0x1e6   : > { %v3506_v14 = vpop.f32.mrb[20].mxu0  ;;  %v3508_v15 = vpop.f32.mrb[20].mxu1 }
 0x1e7   : > { %v2874_v16 = vpop.f32.mrb[21].mxu0  ;;  %v2880_v17 = vpop.f32.mrb[21].mxu1  ;;  %v1174_v18 = vsel %vm624_vm2, %v3508_v15, -inf  ;;  %v1171_v20 = vsel %vm624_vm2, %v3506_v14, -inf }
 0x1e8   : > { %v975_v21 = vpop.f32.mrb[22].mxu1  ;;  %1175 = vmax.xlane.f32.xlu1 %v1174_v18  ;;  %1172 = vmax.xlane.f32.xlu0 %v1171_v20  ;;  %v932_v22 = vpop.f32.mrb[22].mxu0 }
 0x1e9   : > { %v2875_v23 = vpop.f32.mrb[23].mxu0  ;;  %v2881_v24 = vpop.f32.mrb[23].mxu1 }
 0x1ee   : > { %v3514_v25 = vpop.f32.mrb[24].mxu0  ;;  %v3516_v26 = vpop.f32.mrb[24].mxu1 }
 0x1ef   : > { %v2886_v27 = vpop.f32.mrb[25].mxu0  ;;  %v2892_v28 = vpop.f32.mrb[25].mxu1  ;;  %v1180_v29 = vsel %vm624_vm2, %v3516_v26, -inf  ;;  %v1177_v30 = vsel %vm624_vm2, %v3514_v25, -inf }
 0x1f0   : > { %v1064_v31 = vpop.f32.mrb[26].mxu1  ;;  %1181 = vmax.xlane.f32.xlu1 %v1180_v29  ;;  %1178 = vmax.xlane.f32.xlu0 %v1177_v30  ;;  %v1018_v32 = vpop.f32.mrb[26].mxu0 }
 0x1f1   : > { %v2887_v33 = vpop.f32.mrb[27].mxu0  ;;  %v2893_v35 = vpop.f32.mrb[27].mxu1 }
 0x1f6   : > { %v3522_v36 = vpop.f32.mrb[28].mxu0  ;;  %v3524_v37 = vpop.f32.mrb[28].mxu1 }
 0x1f7   : > { %v2898_v39 = vpop.f32.mrb[29].mxu0  ;;  %v2904_v40 = vpop.f32.mrb[29].mxu1  ;;  %v1186_v41 = vsel %vm624_vm2, %v3524_v37, -inf  ;;  %v1183_v42 = vsel %vm624_vm2, %v3522_v36, -inf }
 0x1f8   : > { %v1150_v43 = vpop.f32.mrb[30].mxu1  ;;  %1187 = vmax.xlane.f32.xlu1 %v1186_v41  ;;  %1184 = vmax.xlane.f32.xlu0 %v1183_v42  ;;  %v1107_v44 = vpop.f32.mrb[30].mxu0  ;;  %v1309_v40 = vlaneseq  ;;  %v1691_v41 = vld [vmem:[%s4096_s4] sm:$0xf] }
 0x1f9   : > { %v2899_v45 = vpop.f32.mrb[31].mxu0  ;;  %v2905_v48 = vpop.f32.mrb[31].mxu1  ;;  %v1708_v44 = vsel %vm1706_vm3, %v1691_v41, 0 }
 0x1fa   : > { %2907 = vmatpush3.bf16.msra.mxu0 %v1708_v44 }
 0x1fb   : > { %2918 = vmatprep.subr.bf16.mxu0 %v3215_v1 }
 0x25d   : > { %v1155_v49 = vpop.xlane.xlu0 %1154 }
 0x25e   : > { %v1189_v50 = vsub.f32 %v3482_v46, %v1155_v49 }
 0x260   : > { %v1201_v51 = vmul.f32 1.442695, %v1189_v50  ;;  %v3591_v50 = vunpack.c.l.bf16 %v3386_v19  ;;  %v1301_v19 = vld [vmem:[%s4094_s2] sm:$0x3] }
 0x261   : > { %v1158_v52 = vpop.xlane.xlu0 %1157 }
 0x262   : > { %3055 = vpow2.f32 %v1201_v51  ;;  %v1190_v53 = vsub.f32 %v3484_v47, %v1158_v52  ;;  %v1297_v52 = vunpack.c.l.bf16 %v3382_v11  ;;  %v3609_v11 = vunpack.c.l.bf16 %v3432_v38 }
 0x264   : > { %v1203_v54 = vmul.f32 1.442695, %v1190_v53 }
 0x265   : > { %v1161_v55 = vpop.xlane.xlu1 %1160 }
 0x266   : > { %3057 = vpow2.f32 %v1203_v54  ;;  %v1191_v58 = vsub.f32 %v3490_v56, %v1161_v55  ;;  %v1302_v54 = vld [vmem:[%s4094_s2 + $0x2] sm:$0x3] }
 0x268   : > { %v1205_v59 = vmul.f32 1.442695, %v1191_v58  ;;  %v1306_v58 = vunpack.c.l.bf16 %v1302_v54 }
 0x269   : > { %v1164_v60 = vpop.xlane.xlu1 %1163 }
 0x26a   : > { %3059 = vpow2.f32 %v1205_v59  ;;  %v1192_v61 = vsub.f32 %v3492_v57, %v1164_v60  ;;  %v3614_v60 = vunpack.c.l.bf16 %v3414_v34 }
 0x26c   : > { %v3534_v62 = vpop.eup %3055  ;;  %v1207_v63 = vmul.f32 1.442695, %v1192_v61  ;;  %v1305_v61 = vunpack.c.l.bf16 %v1301_v19 }
 0x26d   : > { %v1170_v0 = vpop.xlane.xlu1 %1169  ;;  %v1167_v46 = vpop.xlane.xlu0 %1166  ;;  %v1225_v2 = vsel %vm624_vm2, %v3534_v62, 0.0 }
 0x26e   : > { %3061 = vpow2.f32 %v1207_v63  ;;  %v1194_v47 = vsub.f32 %v3500_v4, %v1170_v0  ;;  %v1193_v5 = vsub.f32 %v3498_v3, %v1167_v46  ;;  %1226 = vadd.xlane.f32.xlu0 %v1225_v2  ;;  %v1304_v0 = vld [vmem:[%s4094_s2 + $0x6] sm:$0x3]  ;;  %v1303_v46 = vld [vmem:[%s4094_s2 + $0x4] sm:$0x3] }
 0x270   : > { %v3540_v56 = vpop.eup %3057  ;;  %v1211_v6 = vmul.f32 1.442695, %v1194_v47  ;;  %v1209_v7 = vmul.f32 1.442695, %v1193_v5  ;;  %v1308_v5 = vunpack.c.l.bf16 %v1304_v0 }
 0x271   : > { %v1228_v57 = vsel %vm624_vm2, %v3540_v56, 0.0 }
 0x272   : > { %3063 = vpow2.f32 %v1211_v6  ;;  %1229 = vadd.xlane.f32.xlu1 %v1228_v57 }
 0x273   : > { %3065 = vpow2.f32 %v1209_v7 }
 0x274   : > { %v3544_v8 = vpop.eup %3059 }
 0x275   : > { %v1176_v9 = vpop.xlane.xlu1 %1175  ;;  %v1173_v10 = vpop.xlane.xlu0 %1172  ;;  %v1231_v4 = vsel %vm624_vm2, %v3544_v8, 0.0 }
 0x276   : > { %v1196_v3 = vsub.f32 %v3508_v15, %v1176_v9  ;;  %v1195_v12 = vsub.f32 %v3506_v14, %v1173_v10  ;;  %1232 = vadd.xlane.f32.xlu0 %v1231_v4  ;;  %v1307_v9 = vunpack.c.l.bf16 %v1303_v46  ;;  %v1514_v4 = vld [vmem:[%s4095_s3 + $0x1] sm:$0x1] }
 0x278   : > { %v3550_v13 = vpop.eup %3061  ;;  %v1215_v16 = vmul.f32 1.442695, %v1196_v3  ;;  %v1213_v17 = vmul.f32 1.442695, %v1195_v12  ;;  %v1513_v3 = vld [vmem:[%s4095_s3] sm:$0x1] }
 0x279   : > { %v1234_v18 = vsel %vm624_vm2, %v3550_v13, 0.0 }
 0x27a   : > { %3067 = vpow2.f32 %v1215_v16  ;;  %1235 = vadd.xlane.f32.xlu1 %v1234_v18 }
 0x27b   : > { %3069 = vpow2.f32 %v1213_v17  ;;  %v1526_v17 = vunpack.c.l.bf16 %v1514_v4 }
 0x27c   : > { %v3554_v20 = vpop.eup %3063 }
 0x27d   : > { %v3556_v21 = vpop.eup %3065  ;;  %v1182_v22 = vpop.xlane.xlu1 %1181  ;;  %v1240_v14 = vsel %vm624_vm2, %v3554_v20, 0.0 }
 0x27e   : > { %v1179_v23 = vpop.xlane.xlu0 %1178  ;;  %v1198_v15 = vsub.f32 %v3516_v26, %v1182_v22  ;;  %1241 = vadd.xlane.f32.xlu1 %v1240_v14  ;;  %v1237_v27 = vsel %vm624_vm2, %v3556_v21, 0.0  ;;  %v1516_v14 = vld [vmem:[%s4095_s3 + $0x3] sm:$0x1] }
 0x27f   : > { %v1197_v24 = vsub.f32 %v3514_v25, %v1179_v23  ;;  %1238 = vadd.xlane.f32.xlu0 %v1237_v27  ;;  %v1525_v23 = vunpack.c.l.bf16 %v1513_v3  ;;  %v1538_v27 = vmul.f32 %v1526_v17, %v1297_v52 }
 0x280   : > { %v1219_v28 = vmul.f32 1.442695, %v1198_v15  ;;  %v1515_v15 = vld [vmem:[%s4095_s3 + $0x2] sm:$0x1] }
 0x281   : > { %v1217_v29 = vmul.f32 1.442695, %v1197_v24 }
 0x282   : > { %3071 = vpow2.f32 %v1219_v28  ;;  %v1528_v28 = vunpack.c.l.bf16 %v1516_v14 }
 0x283   : > { %3073 = vpow2.f32 %v1217_v29 }
 0x284   : > { %v3564_v30 = vpop.eup %3067 }
 0x285   : > { %v3566_v31 = vpop.eup %3069  ;;  %v1188_v32 = vpop.xlane.xlu1 %1187  ;;  %v1246_v26 = vsel %vm624_vm2, %v3564_v30, 0.0 }
 0x286   : > { %v1185_v33 = vpop.xlane.xlu0 %1184  ;;  %v1200_v25 = vsub.f32 %v3524_v37, %v1188_v32  ;;  %1247 = vadd.xlane.f32.xlu1 %v1246_v26  ;;  %v1243_v39 = vsel %vm624_vm2, %v3566_v31, 0.0  ;;  %v3579_v37 = vshrl.u32 %v1309_v40, 7  ;;  %v1537_v32 = vmul.f32 %v1525_v23, %v1297_v52  ;;  %v1518_v26 = vld [vmem:[%s4095_s3 + $0x5] sm:$0x1] }
 0x287   : > { %v1199_v35 = vsub.f32 %v3522_v36, %v1185_v33  ;;  %1244 = vadd.xlane.f32.xlu0 %v1243_v39  ;;  %v1692_v36 = vld [vmem:[%s4096_s4 + $0x4] sm:$0xf]  ;;  %v1527_v33 = vunpack.c.l.bf16 %v1515_v15  ;;  %v1540_v39 = vmul.f32 %v1528_v28, %v3591_v50  ;;  %v1530_v41 = vunpack.c.l.bf16 %v1518_v26  ;;  %v1694_v26 = vld [vmem:[%s4096_s4 + $0xc] sm:$0xf] }
 0x288   : > { %v1223_v42 = vmul.f32 1.442695, %v1200_v25  ;;  %v1754_v48 = vsel %vm1706_vm3, %v1692_v36, 0  ;;  %v3602_v55 = vsub.s32 0, %v3579_v37  ;;  %v1517_v25 = vld [vmem:[%s4095_s3 + $0x4] sm:$0x1] }
 0x289   : > { %v1221_v43 = vmul.f32 1.442695, %v1199_v35  ;;  %2913 = vmatpush3.bf16.msra.mxu1 %v1754_v48  ;;  %v1553_v35 = vsel %vm1549_vm5, %v1538_v27, 0.0  ;;  %v1529_v44 = vunpack.c.l.bf16 %v1517_v25  ;;  %v1520_v36 = vld [vmem:[%s4095_s3 + $0x7] sm:$0x1] }
 0x28a   : > { %3075 = vpow2.f32 %v1223_v42  ;;  %2924 = vmatprep.subr.bf16.mxu1 %v3215_v1  ;;  %v1316_v59 = vrot.slane %v3591_v50, %v3602_v55  ;;  %v1312_v63 = vrot.slane %v1297_v52, %v3602_v55  ;;  %v1324_v6 = vrot.slane %v3609_v11, %v3602_v55  ;;  %v1519_v48 = vld [vmem:[%s4095_s3 + $0x6] sm:$0x1] }
 0x28b   : > { %3077 = vpow2.f32 %v1221_v43  ;;  %v1320_v10 = vrot.slane %v3614_v60, %v3602_v55  ;;  %v1550_v42 = vsel %vm1549_vm5, %v1537_v32, 0.0  ;;  %v1539_v43 = vmul.f32 %v1527_v33, %v1297_v52 }
 0x28c   : > { %v3585_v45 = vpop.eup %3071  ;;  %v1326_v34 = vmul.f32 %v1316_v59, %v1306_v58  ;;  %v1325_v57 = vmul.f32 %v1312_v63, %v1305_v61  ;;  %v1328_v16 = vmul.f32 %v1324_v6, %v1308_v5  ;;  %v1532_v54 = vunpack.c.l.bf16 %v1520_v36  ;;  %v1522_v59 = vld [vmem:[%s4095_s3 + $0x9] sm:$0x1]  ;;  %v1521_v61 = vld [vmem:[%s4095_s3 + $0x8] sm:$0x1]  ;;  %v1524_v5 = vld [vmem:[%s4095_s3 + $0xb] sm:$0x1] }
 0x28d   : > { %v3588_v49 = vpop.eup %3073  ;;  %v1252_v51 = vsel %vm624_vm2, %v3585_v45, 0.0  ;;  %v1327_v22 = vmul.f32 %v1320_v10, %v1307_v9  ;;  %v1556_v19 = vsel %vm1549_vm5, %v1539_v43, 0.0  ;;  %v1541_v52 = vmul.f32 %v1529_v44, %v3591_v50  ;;  %v1523_v6 = vld [vmem:[%s4095_s3 + $0xa] sm:$0x1] }
 0x28e   : > { %1253 = vadd.xlane.f32.xlu1 %v1252_v51  ;;  %v1249_v53 = vsel %vm624_vm2, %v3588_v49, 0.0  ;;  %v1333_v12 = vsel %vm1329_vm4, %v1326_v34, 0.0  ;;  %v1330_v18 = vsel %vm1329_vm4, %v1325_v57, 0.0  ;;  %v1339_v24 = vsel %vm1329_vm4, %v1328_v16, 0.0 }
 0x28f   : > { %1250 = vadd.xlane.f32.xlu0 %v1249_v53  ;;  %v1336_v29 = vsel %vm1329_vm4, %v1327_v22, 0.0  ;;  %v1559_v51 = vsel %vm1549_vm5, %v1540_v39, 0.0  ;;  %v1542_v53 = vmul.f32 %v1530_v41, %v3591_v50  ;;  %v1531_v58 = vunpack.c.l.bf16 %v1519_v48 }
 0x290   : > { %v1544_v0 = vmul.f32 %v1532_v54, %v3614_v60  ;;  %v1534_v46 = vunpack.c.l.bf16 %v1522_v59  ;;  %v1533_v34 = vunpack.c.l.bf16 %v1521_v61  ;;  %v1536_v9 = vunpack.c.l.bf16 %v1524_v5  ;;  %v1697_v61 = vld [vmem:[%s4096_s4 + $0x18] sm:$0xf] }
 0x291   : > { %v1565_v63 = vsel %vm1549_vm5, %v1542_v53, 0.0  ;;  %v1543_v50 = vmul.f32 %v1531_v58, %v3614_v60  ;;  %v1535_v3 = vunpack.c.l.bf16 %v1523_v6  ;;  %v1846_v41 = vsel %vm1706_vm3, %v1694_v26, 0 }
 0x292   : > { %v1546_v57 = vmul.f32 %v1534_v46, %v3609_v11  ;;  %v1545_v4 = vmul.f32 %v1533_v34, %v3614_v60  ;;  %v1548_v16 = vmul.f32 %v1536_v9, %v3609_v11  ;;  %v1698_v46 = vld [vmem:[%s4096_s4 + $0x1c] sm:$0xf] }
 0x293   : > { %v1568_v10 = vsel %vm1549_vm5, %v1543_v50, 0.0  ;;  %v2030_v34 = vsel %vm1706_vm3, %v1698_v46, 0 }
 0x294   : > { %v3623_v38 = vpop.eup %3075  ;;  %v1574_v17 = vsel %vm1549_vm5, %v1545_v4, 0.0  ;;  %v1583_v22 = vsel %vm1549_vm5, %v1548_v16, 0.0 }
 0x295   : > { %v3625_v2 = vpop.eup %3077  ;;  %v1258_v47 = vsel %vm624_vm2, %v3623_v38, 0.0 }
 0x296   : > { %1259 = vadd.xlane.f32.xlu1 %v1258_v47  ;;  %v1255_v7 = vsel %vm624_vm2, %v3625_v2, 0.0  ;;  %v1562_v47 = vsel %vm1549_vm5, %v1541_v52, 0.0 }
 0x297   : > { %1256 = vadd.xlane.f32.xlu0 %v1255_v7  ;;  %v1571_v7 = vsel %vm1549_vm5, %v1544_v0, 0.0 }
 0x29a   : > { %1334 = vadd.xlane.f32.xlu1 %v1333_v12  ;;  %v1577_v12 = vsel %vm1549_vm5, %v1546_v57, 0.0  ;;  %v1699_v57 = vld [vmem:[%s4096_s4 + $0x20] sm:$0xf] }
 0x29b   : > { %1331 = vadd.xlane.f32.xlu0 %v1330_v18  ;;  %v1547_v18 = vmul.f32 %v1535_v3, %v3609_v11  ;;  %v1693_v11 = vld [vmem:[%s4096_s4 + $0x8] sm:$0xf]  ;;  %v2076_v4 = vsel %vm1706_vm3, %v1699_v57, 0  ;;  %v1700_v3 = vld [vmem:[%s4096_s4 + $0x24] sm:$0xf] }
 0x29c   : > { %v1800_v32 = vsel %vm1706_vm3, %v1693_v11, 0 }
 0x29d   : > { %v1580_v23 = vsel %vm1549_vm5, %v1547_v18, 0.0 }
 0x29e   : > { %1340 = vadd.xlane.f32.xlu1 %v1339_v24 }
 0x29f   : > { %1337 = vadd.xlane.f32.xlu0 %v1336_v29 }
 0x2a2   : > { %1554 = vadd.xlane.f32.xlu1 %v1553_v35 }
 0x2a3   : > { %1551 = vadd.xlane.f32.xlu0 %v1550_v42 }
 0x2a6   : > { %1560 = vadd.xlane.f32.xlu1 %v1559_v51  ;;  %v1696_v51 = vld [vmem:[%s4096_s4 + $0x14] sm:$0xf] }
 0x2a7   : > { %1557 = vadd.xlane.f32.xlu0 %v1556_v19  ;;  %v1938_v52 = vsel %vm1706_vm3, %v1696_v51, 0  ;;  %v2340_v51 = vld [vmem:[%s4098_s6] sm:$0xf] }
 0x2aa   : > { %1566 = vadd.xlane.f32.xlu1 %v1565_v63 }
 0x2ab   : > { %1563 = vadd.xlane.f32.xlu0 %v1562_v47 }
 0x2ae   : > { %1572 = vadd.xlane.f32.xlu1 %v1571_v7 }
 0x2af   : > { %1569 = vadd.xlane.f32.xlu0 %v1568_v10 }
 0x2b2   : > { %1578 = vadd.xlane.f32.xlu1 %v1577_v12 }
 0x2b3   : > { %1575 = vadd.xlane.f32.xlu0 %v1574_v17 }
 0x2b6   : > { %1584 = vadd.xlane.f32.xlu1 %v1583_v22 }
 0x2b7   : > { %1581 = vadd.xlane.f32.xlu0 %v1580_v23 }
 0x2fb   : > { %v1227_v60 = vpop.xlane.xlu0 %1226 }
 0x2fc   : > { %3079 = vrcp.f32 %v1227_v60 }
 0x2ff   : > { %v1230_v14 = vpop.xlane.xlu1 %1229 }
 0x300   : > { %3081 = vrcp.f32 %v1230_v14  ;;  %v1701_v14 = vld [vmem:[%s4096_s4 + $0x28] sm:$0xf] }
 0x303   : > { %v1233_v15 = vpop.xlane.xlu0 %1232 }
 0x304   : > { %3083 = vrcp.f32 %v1233_v15 }
 0x306   : > { %v3080_v24 = vpop.eup %3079 }
 0x307   : > { %v1273_v27 = vmul.f32 %v3080_v24, %v3534_v62  ;;  %v1236_v28 = vpop.xlane.xlu1 %1235 }
 0x308   : > { %3085 = vrcp.f32 %v1236_v28  ;;  %v1702_v28 = vld [vmem:[%s4096_s4 + $0x2c] sm:$0xf] }
 0x309   : > { %1285 = vst.msk [vmem:[%s3700_s26] sm:$0xff] %vm624_vm2, %v1273_v27  ;;  %v1679_v29 = vpack.c.bf16 %v1273_v27, %v1273_v27 }
 0x30a   : > { %v3082_v33 = vpop.eup %3081 }
 0x30b   : > { %v1274_v25 = vmul.f32 %v3082_v33, %v3540_v56  ;;  %v1242_v35 = vpop.xlane.xlu1 %1241  ;;  %2909 = vmatmul.mubr.msk.bf16.vlgmr.msra.gmra.mrb[32].mxu0 %vm624_vm2, %v1679_v29  ;;  %v1695_v56 = vld [vmem:[%s4096_s4 + $0x10] sm:$0xf] }
 0x30c   : > { %3087 = vrcp.f32 %v1242_v35  ;;  %v1239_v62 = vpop.xlane.xlu0 %1238  ;;  %2919 = vmatpush3.bf16.msra.mxu0 %v1800_v32  ;;  %2920 = vmatprep.mubr.msk.bf16.mxu0 %vm3216_vm0, %v3215_v1  ;;  %v1892_v36 = vsel %vm1706_vm3, %v1695_v56, 0  ;;  %v2214_v35 = vsel %vm1706_vm3, %v1702_v28, 0 }
 0x30d   : > { %1286 = vst.msk [vmem:[%s3700_s26 + $0x8] sm:$0xff] %vm624_vm2, %v1274_v25  ;;  %3089 = vrcp.f32 %v1239_v62  ;;  %v1680_v39 = vpack.c.bf16 %v1274_v25, %v1274_v25  ;;  %2930 = vmatprep.subr.bf16.mxu0 %v3215_v1 }
 0x30e   : > { %v3084_v42 = vpop.eup %3083 }
 0x30f   : > { %v1275_v43 = vmul.f32 %v3084_v42, %v3544_v8  ;;  %2915 = vmatmul.mubr.msk.bf16.vlgmr.msra.gmra.mrb[32].mxu1 %vm624_vm2, %v1680_v39 }
 0x310   : > { %2925 = vmatpush3.bf16.msra.mxu1 %v1846_v41  ;;  %2926 = vmatprep.mubr.msk.bf16.mxu1 %vm3216_vm0, %v3215_v1 }
 0x311   : > { %1287 = vst.msk [vmem:[%s3700_s26 + $0x10] sm:$0xff] %vm624_vm2, %v1275_v43  ;;  %v1681_v44 = vpack.c.bf16 %v1275_v43, %v1275_v43  ;;  %2936 = vmatprep.subr.bf16.mxu1 %v3215_v1 }
 0x312   : > { %v3086_v48 = vpop.eup %3085 }
 0x313   : > { %v1276_v8 = vmul.f32 %v3086_v48, %v3550_v13  ;;  %v1248_v53 = vpop.xlane.xlu1 %1247  ;;  %2921 = vmatmul.mubr.msk.bf16.vlgmr.msra.gmra.mrb[36].mxu0 %vm624_vm2, %v1681_v44 }
 0x314   : > { %3091 = vrcp.f32 %v1248_v53  ;;  %v1245_v54 = vpop.xlane.xlu0 %1244  ;;  %2931 = vmatpush3.bf16.msra.mxu0 %v1892_v36  ;;  %2932 = vmatprep.mubr.msk.bf16.mxu0 %vm3216_vm0, %v3215_v1  ;;  %v2341_v53 = vld [vmem:[%s4098_s6 + $0x4] sm:$0xf] }
 0x315   : > { %1288 = vst.msk [vmem:[%s3700_s26 + $0x18] sm:$0xff] %vm624_vm2, %v1276_v8  ;;  %3093 = vrcp.f32 %v1245_v54  ;;  %v1682_v19 = vpack.c.bf16 %v1276_v8, %v1276_v8  ;;  %2942 = vmatprep.subr.bf16.mxu0 %v3215_v1  ;;  %v2348_v8 = vsel %vm1706_vm3, %v2340_v51, 0  ;;  %v2394_v54 = vsel %vm1706_vm3, %v2341_v53, 0 }
 0x316   : > { %v3088_v13 = vpop.eup %3087 }
 0x317   : > { %v3090_v58 = vpop.eup %3089  ;;  %v1278_v59 = vmul.f32 %v3088_v13, %v3554_v20  ;;  %2927 = vmatmul.mubr.msk.bf16.vlgmr.msra.gmra.mrb[36].mxu1 %vm624_vm2, %v1682_v19  ;;  %v1984_v20 = vsel %vm1706_vm3, %v1697_v61, 0 }
 0x318   : > { %v1277_v63 = vmul.f32 %v3090_v58, %v3556_v21  ;;  %2937 = vmatpush3.bf16.msra.mxu1 %v1938_v52  ;;  %2938 = vmatprep.mubr.msk.bf16.mxu1 %vm3216_vm0, %v3215_v1 }
 0x319   : > { %1290 = vst.msk [vmem:[%s3700_s26 + $0x28] sm:$0xff] %vm624_vm2, %v1278_v59  ;;  %2948 = vmatprep.subr.bf16.mxu1 %v3215_v1  ;;  %v1684_v50 = vpack.c.bf16 %v1278_v59, %v1278_v59 }
 0x31a   : > { %1289 = vst.msk [vmem:[%s3700_s26 + $0x20] sm:$0xff] %vm624_vm2, %v1277_v63  ;;  %v1683_v0 = vpack.c.bf16 %v1277_v63, %v1277_v63 }
 0x31b   : > { %v1254_v47 = vpop.xlane.xlu1 %1253 }
 0x31c   : > { %3095 = vrcp.f32 %v1254_v47  ;;  %2933 = vmatmul.mubr.msk.bf16.vlgmr.msra.gmra.mrb[40].mxu0 %vm624_vm2, %v1683_v0  ;;  %v1251_v21 = vpop.xlane.xlu0 %1250 }
 0x31d   : > { %3097 = vrcp.f32 %v1251_v21  ;;  %2943 = vmatpush3.bf16.msra.mxu0 %v1984_v20  ;;  %2944 = vmatprep.mubr.msk.bf16.mxu0 %vm3216_vm0, %v3215_v1 }
 0x31e   : > { %v3092_v5 = vpop.eup %3091  ;;  %2954 = vmatprep.subr.bf16.mxu0 %v3215_v1 }
 0x31f   : > { %v3094_v6 = vpop.eup %3093  ;;  %v1280_v7 = vmul.f32 %v3092_v5, %v3564_v30  ;;  %2939 = vmatmul.mubr.msk.bf16.vlgmr.msra.gmra.mrb[40].mxu1 %vm624_vm2, %v1684_v50  ;;  %v1347_v30 = vand.u32 127, %v1309_v40  ;;  %v2122_v40 = vsel %vm1706_vm3, %v1700_v3, 0 }
 0x320   : > { %v1279_v9 = vmul.f32 %v3094_v6, %v3566_v31  ;;  %2949 = vmatpush3.bf16.msra.mxu1 %v2030_v34  ;;  %2950 = vmatprep.mubr.msk.bf16.mxu1 %vm3216_vm0, %v3215_v1 }
 0x321   : > { %1292 = vst.msk [vmem:[%s3700_s26 + $0x38] sm:$0xff] %vm624_vm2, %v1280_v7  ;;  %2960 = vmatprep.subr.bf16.mxu1 %v3215_v1  ;;  %v1686_v16 = vpack.c.bf16 %v1280_v7, %v1280_v7  ;;  %v3787_v18 = vsub.s32 %v1347_v30, %v3579_v37 }
 0x322   : > { %1291 = vst.msk [vmem:[%s3700_s26 + $0x30] sm:$0xff] %vm624_vm2, %v1279_v9  ;;  %v1685_v10 = vpack.c.bf16 %v1279_v9, %v1279_v9 }
 0x323   : > { %v1260_v31 = vpop.xlane.xlu1 %1259 }
 0x324   : > { %3099 = vrcp.f32 %v1260_v31  ;;  %2945 = vmatmul.mubr.msk.bf16.vlgmr.msra.gmra.mrb[44].mxu0 %vm624_vm2, %v1685_v10  ;;  %v1257_v12 = vpop.xlane.xlu0 %1256 }
 0x325   : > { %3101 = vrcp.f32 %v1257_v12  ;;  %2955 = vmatpush3.bf16.msra.mxu0 %v2076_v4  ;;  %2956 = vmatprep.mubr.msk.bf16.mxu0 %vm3216_vm0, %v3215_v1 }
 0x326   : > { %v3096_v17 = vpop.eup %3095  ;;  %2966 = vmatprep.subr.bf16.mxu0 %v3215_v1 }
 0x327   : > { %v3098_v22 = vpop.eup %3097  ;;  %v1282_v23 = vmul.f32 %v3096_v17, %v3585_v45  ;;  %2951 = vmatmul.mubr.msk.bf16.vlgmr.msra.gmra.mrb[44].mxu1 %vm624_vm2, %v1686_v16  ;;  %v3792_v60 = vpop.xlane.xlu1 %1334 }
 0x328   : > { %v1281_v15 = vmul.f32 %v3098_v22, %v3588_v49  ;;  %v3798_v24 = vpop.xlane.xlu0 %1331  ;;  %2961 = vmatpush3.bf16.msra.mxu1 %v2122_v40  ;;  %2962 = vmatprep.mubr.msk.bf16.mxu1 %vm3216_vm0, %v3215_v1  ;;  %v1355_v45 = vrot.slane %v3792_v60, %v3787_v18  ;;  %v2168_v49 = vsel %vm1706_vm3, %v1701_v14, 0 }
 0x329   : > { %1294 = vst.msk [vmem:[%s3700_s26 + $0x48] sm:$0xff] %vm624_vm2, %v1282_v23  ;;  %2972 = vmatprep.subr.bf16.mxu1 %v3215_v1  ;;  %v1351_v11 = vrot.slane %v3798_v24, %v3787_v18  ;;  %v1688_v25 = vpack.c.bf16 %v1282_v23, %v1282_v23 }
 0x32a   : > { %1293 = vst.msk [vmem:[%s3700_s26 + $0x40] sm:$0xff] %vm624_vm2, %v1281_v15  ;;  %v1687_v27 = vpack.c.bf16 %v1281_v15, %v1281_v15  ;;  %v1382_v15 = vsub.s32 1, %v3579_v37 }
 0x32b   : > { %v3815_v29 = vpop.xlane.xlu1 %1340  ;;  %v1365_v39 = vsel %vm1364_vm6, %v1355_v45, %v1351_v11  ;;  %v1386_v45 = vsub.s32 2, %v3579_v37 }
 0x32c   : > { %v1363_v32 = vrot.slane %v3815_v29, %v3787_v18  ;;  %2957 = vmatmul.mubr.msk.bf16.vlgmr.msra.gmra.mrb[48].mxu0 %vm624_vm2, %v1687_v27  ;;  %v3820_v33 = vpop.xlane.xlu0 %1337 }
 0x32d   : > { %v1359_v26 = vrot.slane %v3820_v33, %v3787_v18  ;;  %2967 = vmatpush3.bf16.msra.mxu0 %v2168_v49  ;;  %2968 = vmatprep.mubr.msk.bf16.mxu0 %vm3216_vm0, %v3215_v1 }
 0x32e   : > { %v3100_v62 = vpop.eup %3099  ;;  %2978 = vmatprep.subr.bf16.mxu0 %v3215_v1 }
 0x32f   : > { %v3102_v41 = vpop.eup %3101  ;;  %v1284_v42 = vmul.f32 %v3100_v62, %v3623_v38  ;;  %2963 = vmatmul.mubr.msk.bf16.vlgmr.msra.gmra.mrb[48].mxu1 %vm624_vm2, %v1688_v25  ;;  %v1367_v56 = vsel %vm1366_vm7, %v1359_v26, %v1365_v39  ;;  %v1555_v52 = vpop.xlane.xlu1 %1554 }
 0x330   : > { %v1283_v43 = vmul.f32 %v3102_v41, %v3625_v2  ;;  %v1369_v44 = vsel %vm1368_vm8, %v1363_v32, %v1367_v56  ;;  %2973 = vmatpush3.bf16.msra.mxu1 %v2214_v35  ;;  %2974 = vmatprep.mubr.msk.bf16.mxu1 %vm3216_vm0, %v3215_v1  ;;  %v3217_v2 = vmov 0   ;;  %v1552_v19 = vpop.xlane.xlu0 %1551  ;;  %v1588_v58 = vsel %vm1586_vm10, %v1555_v52, -inf }
 0x331   : > { %1296 = vst.msk [vmem:[%s3700_s26 + $0x58] sm:$0xff] %vm624_vm2, %v1284_v42  ;;  %v1372_v36 = vsel %vm1371_vm9, %v1369_v44, -inf  ;;  %2984 = vmatprep.subr.bf16.mxu1 %v3215_v1  ;;  %v1690_v48 = vpack.c.bf16 %v1284_v42, %v1284_v42  ;;  %3046 = vset.pattern.permute.xlu0 %v3217_v2  ;;  %v1587_v59 = vsel %vm1586_vm10, %v1552_v19, -inf  ;;  %v1390_v32 = vsub.s32 3, %v3579_v37 }
 0x332   : > { %1295 = vst.msk [vmem:[%s3700_s26 + $0x50] sm:$0xff] %vm624_vm2, %v1283_v43  ;;  %1373 = vmax.xlane.f32.xlu0 %v1372_v36  ;;  %v1689_v38 = vpack.c.bf16 %v1283_v43, %v1283_v43  ;;  %3045 = vset.pattern.permute.xlu1 %v3217_v2  ;;  %v1589_v63 = vmax.f32 %v1587_v59, %v1588_v58  ;;  %s3151_s26 = scalar_lea.vmem %s2568_s12, 128 }
 0x333   : > { %v1561_v46 = vpop.xlane.xlu1 %1560  ;;  %p3152_p11 = scmp.ne.s32.totalorder %s2568_s12, %s3151_s26  ;;  %p3159_p1 = scmp.lt.s32.totalorder %s3157_s1, %s3151_s26 }
 0x334   : > { %2969 = vmatmul.mubr.msk.bf16.vlgmr.msra.gmra.mrb[52].mxu0 %vm624_vm2, %v1689_v38  ;;  %v1558_v13 = vpop.xlane.xlu0 %1557  ;;  %v1592_v6 = vsel %vm1586_vm10, %v1561_v46, -inf }
 0x335   : > { %2980 = vmatprep.mubr.msk.bf16.mxu0 %vm3216_vm0, %v3215_v1  ;;  %2979 = vmatpush3.bf16.msra.mxu0 %v2348_v8  ;;  %v1590_v61 = vsel %vm1586_vm10, %v1558_v13, -inf  ;;  %p3153_p12 = pnand %p3152_p11, %p3312_p5  ;;  %p3160_p2 = por %p3159_p1, %p3158_p0 }
 0x336   : > { %2990 = vmatprep.subr.bf16.mxu0 %v3215_v1  ;;  %v1591_v0 = vmax.f32 %v1589_v63, %v1590_v61 }
 0x337   : > { %2975 = vmatmul.mubr.msk.bf16.vlgmr.msra.gmra.mrb[52].mxu1 %vm624_vm2, %v1690_v48  ;;  %v1567_v57 = vpop.xlane.xlu1 %1566  ;;  %p3154_p13 = pneg %p3153_p12 }
 0x338   : > { %2986 = vmatprep.mubr.msk.bf16.mxu1 %vm3216_vm0, %v3215_v1  ;;  %2985 = vmatpush3.bf16.msra.mxu1 %v2394_v54  ;;  %v1564_v20 = vpop.xlane.xlu0 %1563  ;;  %v1607_v47 = vsub.f32 %v1552_v19, %v1591_v0  ;;  %v1608_v21 = vsub.f32 %v1555_v52, %v1591_v0  ;;  %v1609_v10 = vsub.f32 %v1558_v13, %v1591_v0  ;;  %v1595_v30 = vsel %vm1586_vm10, %v1567_v57, -inf }
 0x339   : > { %2996 = vmatprep.subr.bf16.mxu1 %v3215_v1  ;;  %v1593_v50 = vsel %vm1586_vm10, %v1564_v20, -inf  ;;  %p3161_p3 = pnand %p3160_p2, %p3154_p13 }
 0x33a   : > { %v1619_v34 = vmul.f32 1.442695, %v1607_v47  ;;  %v1621_v7 = vmul.f32 1.442695, %v1608_v21  ;;  %v1594_v9 = vmax.f32 %v1592_v6, %v1593_v50  ;;  %v1623_v31 = vmul.f32 1.442695, %v1609_v10 }
 0x33b   : > { %v1573_v12 = vpop.xlane.xlu1 %1572 }
 0x33c   : > { %v1570_v5 = vpop.xlane.xlu0 %1569  ;;  %3103 = vpow2.f32 %v1619_v34  ;;  %v1596_v4 = vmax.f32 %v1594_v9, %v1595_v30  ;;  %v1598_v40 = vsel %vm1586_vm10, %v1573_v12, -inf }
 0x33d   : > { %3105 = vpow2.f32 %v1621_v7  ;;  %v1597_v17 = vsel %vm1586_vm10, %v1570_v5, -inf }
 0x33e   : > { %v1610_v16 = vsub.f32 %v1561_v46, %v1596_v4  ;;  %3107 = vpow2.f32 %v1623_v31  ;;  %v1611_v22 = vsub.f32 %v1564_v20, %v1596_v4  ;;  %v1599_v49 = vmax.f32 %v1597_v17, %v1598_v40 }
 0x33f   : > { %v1612_v43 = vsub.f32 %v1567_v57, %v1596_v4  ;;  %v1579_v2 = vpop.xlane.xlu1 %1578 }
 0x340   : > { %v3864_v3 = vpop.xlane.xlu0 %1575  ;;  %v1625_v27 = vmul.f32 1.442695, %v1610_v16  ;;  %v1627_v26 = vmul.f32 1.442695, %v1611_v22  ;;  %v1602_v61 = vsel %vm1586_vm10, %v1579_v2, -inf }
 0x341   : > { %v1600_v14 = vsel %vm1586_vm10, %v3864_v3, -inf  ;;  %v1629_v13 = vmul.f32 1.442695, %v1612_v43 }
 0x342   : > { %v1601_v25 = vmax.f32 %v1599_v49, %v1600_v14  ;;  %3109 = vpow2.f32 %v1625_v27 }
 0x343   : > { %3111 = vpow2.f32 %v1627_v26  ;;  %v1585_v20 = vpop.xlane.xlu1 %1584 }
 0x344   : > { %v3868_v23 = vpop.xlane.xlu0 %1581  ;;  %v1613_v51 = vsub.f32 %v1570_v5, %v1601_v25  ;;  %v1614_v8 = vsub.f32 %v1573_v12, %v1601_v25  ;;  %v1605_v50 = vsel %vm1586_vm10, %v1585_v20, -inf }
 0x345   : > { %v1603_v58 = vsel %vm1586_vm10, %v3868_v23, -inf }
 0x346   : > { %v3874_v11 = vpop.eup %3103  ;;  %v1633_v63 = vmul.f32 1.442695, %v1614_v8  ;;  %v1604_v46 = vmax.f32 %v1602_v61, %v1603_v58 }
 0x347   : > { %v3876_v28 = vpop.eup %3105  ;;  %v1643_v42 = vsel %vm1586_vm10, %v3874_v11, 0.0 }
 0x348   : > { %v1644_v56 = vsel %vm1586_vm10, %v3876_v28, 0.0  ;;  %v3893_v19 = vpop.eup %3107  ;;  %v1606_v5 = vmax.f32 %v1604_v46, %v1605_v50 }
 0x349   : > { %v1645_v52 = vadd.f32 %v1644_v56, %v1643_v42 }
 0x34a   : > { %v1616_v30 = vsub.f32 %v1579_v2, %v1606_v5  ;;  %v1617_v4 = vsub.f32 %v3868_v23, %v1606_v5  ;;  %v1618_v26 = vsub.f32 %v1585_v20, %v1606_v5 }
 0x34c   : > { %v3901_v21 = vpop.eup %3109  ;;  %v1637_v40 = vmul.f32 1.442695, %v1616_v30  ;;  %v1639_v14 = vmul.f32 1.442695, %v1617_v4 }
 0x34d   : > { %v3905_v34 = vpop.eup %3111  ;;  %v1648_v7 = vsel %vm1586_vm10, %v3901_v21, 0.0 }
 0x34e   : > { %v1649_v57 = vsel %vm1586_vm10, %v3905_v34, 0.0 }
 0x34f   : > { %v1650_v31 = vadd.f32 %v1649_v57, %v1648_v7 }
 0x3bf   : > { %v1374_v35 = vpop.xlane.xlu0 %1373 }
 0x3c0   : > { %v1379_v62 = vrot.slane %v1374_v35, %v3602_v55  ;;  %v1383_v39 = vrot.slane %v1374_v35, %v1382_v15  ;;  %v1387_v41 = vrot.slane %v1374_v35, %v1386_v45  ;;  %v1391_v44 = vrot.slane %v1374_v35, %v1390_v32 }
 0x3c2   : > { %v1396_v36 = vsub.f32 %v3798_v24, %v1379_v62  ;;  %v1397_v38 = vsub.f32 %v3792_v60, %v1383_v39  ;;  %v1398_v48 = vsub.f32 %v3820_v33, %v1387_v41  ;;  %v1399_v59 = vsub.f32 %v3815_v29, %v1391_v44 }
 0x3c3   : > { %v1631_v60 = vmul.f32 1.442695, %v1613_v51  ;;  %v1646_v33 = vsel %vm1586_vm10, %v3893_v19, 0.0  ;;  %v1615_v29 = vsub.f32 %v3864_v3, %v1601_v25  ;;  %v1641_v39 = vmul.f32 1.442695, %v1618_v26 }
 0x3c4   : > { %v1400_v53 = vmul.f32 1.442695, %v1396_v36  ;;  %v1402_v54 = vmul.f32 1.442695, %v1397_v38  ;;  %v1404_v24 = vmul.f32 1.442695, %v1398_v48  ;;  %v1647_v0 = vadd.f32 %v1646_v33, %v1645_v52 }
 0x3c5   : > { %v1406_v47 = vmul.f32 1.442695, %v1399_v59  ;;  %v1635_v9 = vmul.f32 1.442695, %v1615_v29 }
 0x3c6   : > { %3113 = vpow2.f32 %v1400_v53 }
 0x3c7   : > { %3115 = vpow2.f32 %v1402_v54 }
 0x3c8   : > { %3117 = vpow2.f32 %v1629_v13 }
 0x3c9   : > { %3119 = vpow2.f32 %v1404_v24 }
 0x3ca   : > { %3121 = vpow2.f32 %v1631_v60 }
 0x3cb   : > { %3123 = vpow2.f32 %v1633_v63 }
 0x3cc   : > { %3125 = vrcp.f32 %v1647_v0 }
 0x3cd   : > { %3127 = vpow2.f32 %v1406_v47 }
 0x3ce   : > { %3129 = vpow2.f32 %v1635_v9  ;;  %v2342_v9 = vld [vmem:[%s4098_s6 + $0x8] sm:$0xf] }
 0x3cf   : > { %3131 = vpow2.f32 %v1637_v40 }
 0x3d0   : > { %v3907_v6 = vpop.eup %3113  ;;  %3133 = vpow2.f32 %v1639_v14 }
 0x3d1   : > { %v3913_v10 = vpop.eup %3115  ;;  %1413 = vperm.xlu1 %3045, %v3907_v6  }
 0x3d2   : > { %1416 = vperm.xlu0 %3046, %v3913_v10   ;;  %v3918_v3 = vpop.eup %3117 }
 0x3d3   : > { %v3920_v12 = vpop.eup %3119  ;;  %v1651_v22 = vsel %vm1586_vm10, %v3918_v3, 0.0 }
 0x3d4   : > { %v3922_v16 = vpop.eup %3121  ;;  %v1652_v27 = vadd.f32 %v1651_v22, %v1650_v31 }
 0x3d5   : > { %1419 = vperm.xlu1 %3045, %v3920_v12   ;;  %v3925_v17 = vpop.eup %3123  ;;  %v1653_v25 = vsel %vm1586_vm10, %v3922_v16, 0.0 }
 0x3d6   : > { %v3126_v23 = vpop.eup %3125  ;;  %3135 = vrcp.f32 %v1652_v27  ;;  %v1654_v35 = vsel %vm1586_vm10, %v3925_v17, 0.0 }
 0x3d7   : > { %v3929_v49 = vpop.eup %3127  ;;  %v1664_v62 = vmul.f32 %v3126_v23, %v3874_v11  ;;  %v1665_v41 = vmul.f32 %v3126_v23, %v3876_v28  ;;  %v1655_v56 = vadd.f32 %v1654_v35, %v1653_v25  ;;  %3137 = vpow2.f32 %v1641_v39 }
 0x3d8   : > { %v3938_v42 = vpop.eup %3129  ;;  %v1666_v11 = vmul.f32 %v3126_v23, %v3893_v19 }
 0x3d9   : > { %1422 = vperm.xlu1 %3045, %v3929_v49   ;;  %v2259_v44 = vrot.slane %v1664_v62, %v3602_v55  ;;  %v1656_v48 = vsel %vm1586_vm10, %v3938_v42, 0.0  ;;  %v2263_v8 = vrot.slane %v1665_v41, %v3602_v55  ;;  %v3945_v54 = vpop.eup %3131 }
 0x3da   : > { %v1657_v53 = vadd.f32 %v1656_v48, %v1655_v56  ;;  %v3947_v58 = vpop.eup %3133  ;;  %v2267_v63 = vrot.slane %v1666_v11, %v3602_v55  ;;  %v1658_v47 = vsel %vm1586_vm10, %v3945_v54, 0.0 }
 0x3db   : > { %v1659_v29 = vsel %vm1586_vm10, %v3947_v58, 0.0 }
 0x3dc   : > { %3139 = vrcp.f32 %v1657_v53  ;;  %v1660_v22 = vadd.f32 %v1659_v29, %v1658_v47 }
 0x3de   : > { %v1744_v43 = vpop.f32.mrb[32].mxu0 }
 0x3df   : > { %v2910_v36 = vpop.f32.mrb[33].mxu0  ;;  %v2304_v2 = vmul.f32 %v2259_v44, %v1744_v43 }
 0x3e0   : > { %v1747_v38 = vpop.f32.mrb[34].mxu0  ;;  %v3136_v24 = vpop.eup %3135 }
 0x3e1   : > { %v2911_v51 = vpop.f32.mrb[35].mxu0  ;;  %v2316_v60 = vsel %vm624_vm2, %v2304_v2, 0.0  ;;  %v1668_v5 = vmul.f32 %v3136_v24, %v3901_v21  ;;  %v3961_v30 = vpop.eup %3137  ;;  %v1669_v40 = vmul.f32 %v3136_v24, %v3905_v34  ;;  %v2440_v21 = vsel %vm1706_vm3, %v2342_v9, 0 }
 0x3e2   : > { %v1790_v28 = vpop.f32.mrb[32].mxu1  ;;  %v1670_v35 = vmul.f32 %v3136_v24, %v3918_v3  ;;  %v1661_v62 = vsel %vm1586_vm10, %v3961_v30, 0.0 }
 0x3e3   : > { %v2305_v52 = vmul.f32 %v2263_v8, %v1790_v28  ;;  %v2916_v13 = vpop.f32.mrb[33].mxu1  ;;  %v2271_v27 = vrot.slane %v1668_v5, %v3602_v55  ;;  %v2275_v41 = vrot.slane %v1669_v40, %v3602_v55  ;;  %v1662_v34 = vadd.f32 %v1661_v62, %v1660_v22 }
 0x3e4   : > { %v1793_v59 = vpop.f32.mrb[34].mxu1  ;;  %v2279_v3 = vrot.slane %v1670_v35, %v3602_v55 }
 0x3e5   : > { %v2317_v33 = vsel %vm624_vm2, %v2305_v52, 0.0  ;;  %v2917_v61 = vpop.f32.mrb[35].mxu1  ;;  %3141 = vrcp.f32 %v1662_v34 }
 0x3e6   : > { %v2318_v0 = vadd.f32 %v2317_v33, %v2316_v60  ;;  %v1836_v19 = vpop.f32.mrb[36].mxu0  ;;  %v3140_v43 = vpop.eup %3139  ;;  %v2343_v33 = vld [vmem:[%s4098_s6 + $0xc] sm:$0xf] }
 0x3e7   : > { %v2306_v20 = vmul.f32 %v2267_v63, %v1836_v19  ;;  %v2922_v46 = vpop.f32.mrb[37].mxu0  ;;  %v1672_v52 = vmul.f32 %v3140_v43, %v3922_v16  ;;  %v1673_v60 = vmul.f32 %v3140_v43, %v3925_v17  ;;  %v1674_v17 = vmul.f32 %v3140_v43, %v3938_v42 }
 0x3e8   : > { %v1839_v50 = vpop.f32.mrb[38].mxu0  ;;  %v2486_v46 = vsel %vm1706_vm3, %v2343_v33, 0 }
 0x3e9   : > { %v2319_v7 = vsel %vm624_vm2, %v2306_v20, 0.0  ;;  %v2923_v57 = vpop.f32.mrb[39].mxu0  ;;  %v2287_v29 = vrot.slane %v1673_v60, %v3602_v55 }
 0x3ea   : > { %v2320_v4 = vadd.f32 %v2319_v7, %v2318_v0  ;;  %v1882_v31 = vpop.f32.mrb[36].mxu1  ;;  %v2283_v0 = vrot.slane %v1672_v52, %v3602_v55 }
 0x3eb   : > { %v2928_v14 = vpop.f32.mrb[37].mxu1  ;;  %v2307_v39 = vmul.f32 %v2271_v27, %v1882_v31 }
 0x3ec   : > { %v2336_v23 = vpack.c.bf16 %v2320_v4, %v2320_v4  ;;  %v1885_v26 = vpop.f32.mrb[38].mxu1 }
 0x3ed   : > { %v2929_v25 = vpop.f32.mrb[39].mxu1  ;;  %v2321_v48 = vsel %vm624_vm2, %v2307_v39, 0.0 }
 0x3ee   : > { %2981 = vmatmul.mubr.msk.bf16.vlgmr.msra.gmra.mrb[56].mxu0 %vm624_vm2, %v2336_v23  ;;  %v2291_v23 = vrot.slane %v1674_v17, %v3602_v55 }
 0x3ef   : > { %v1928_v56 = vpop.f32.mrb[40].mxu0  ;;  %2991 = vmatpush3.bf16.msra.mxu0 %v2440_v21  ;;  %2992 = vmatprep.mubr.msk.bf16.mxu0 %vm3216_vm0, %v3215_v1  ;;  %v3142_v4 = vpop.eup %3141 }
 0x3f0   : > { %v2308_v44 = vmul.f32 %v2275_v41, %v1928_v56  ;;  %v2934_v36 = vpop.f32.mrb[41].mxu0  ;;  %v1676_v42 = vmul.f32 %v3142_v4, %v3945_v54  ;;  %v1677_v39 = vmul.f32 %v3142_v4, %v3947_v58 }
 0x3f1   : > { %v1931_v38 = vpop.f32.mrb[42].mxu0 }
 0x3f2   : > { %v2322_v2 = vsel %vm624_vm2, %v2308_v44, 0.0  ;;  %v2935_v51 = vpop.f32.mrb[43].mxu0  ;;  %v1974_v8 = vpop.f32.mrb[40].mxu1  ;;  %v2295_v56 = vrot.slane %v1676_v42, %v3602_v55  ;;  %v1678_v38 = vmul.f32 %v3142_v4, %v3961_v30 }
 0x3f3   : > { %v2323_v11 = vadd.f32 %v2322_v2, %v2321_v48  ;;  %v2309_v53 = vmul.f32 %v2279_v3, %v1974_v8  ;;  %v2940_v28 = vpop.f32.mrb[41].mxu1  ;;  %v2299_v48 = vrot.slane %v1677_v39, %v3602_v55 }
 0x3f4   : > { %v1977_v13 = vpop.f32.mrb[42].mxu1  ;;  %v2303_v58 = vrot.slane %v1678_v38, %v3602_v55 }
 0x3f5   : > { %v2324_v59 = vsel %vm624_vm2, %v2309_v53, 0.0  ;;  %v2941_v24 = vpop.f32.mrb[43].mxu1 }
 0x3f6   : > { %v2325_v61 = vadd.f32 %v2324_v59, %v2323_v11 }
 0x3f7   : > { %v2020_v63 = vpop.f32.mrb[44].mxu0 }
 0x3f8   : > { %v2337_v19 = vpack.c.bf16 %v2325_v61, %v2325_v61  ;;  %v2946_v20 = vpop.f32.mrb[45].mxu0  ;;  %v2310_v47 = vmul.f32 %v2283_v0, %v2020_v63 }
 0x3f9   : > { %v2023_v16 = vpop.f32.mrb[46].mxu0 }
 0x3fa   : > { %v2947_v50 = vpop.f32.mrb[47].mxu0  ;;  %v2066_v5 = vpop.f32.mrb[44].mxu1  ;;  %2987 = vmatmul.mubr.msk.bf16.vlgmr.msra.gmra.mrb[56].mxu1 %vm624_vm2, %v2337_v19  ;;  %v2326_v31 = vsel %vm624_vm2, %v2310_v47, 0.0 }
 0x3fb   : > { %v2311_v7 = vmul.f32 %v2287_v29, %v2066_v5  ;;  %v2952_v57 = vpop.f32.mrb[45].mxu1  ;;  %2997 = vmatpush3.bf16.msra.mxu1 %v2486_v46  ;;  %2998 = vmatprep.mubr.msk.bf16.mxu1 %vm3216_vm0, %v3215_v1 }
 0x3fc   : > { %v2069_v9 = vpop.f32.mrb[46].mxu1 }
 0x3fd   : > { %v2327_v40 = vsel %vm624_vm2, %v2311_v7, 0.0  ;;  %v2953_v22 = vpop.f32.mrb[47].mxu1 }
 0x3fe   : > { %v2328_v14 = vadd.f32 %v2327_v40, %v2326_v31 }
 0x3ff   : > { %v2112_v27 = vpop.f32.mrb[48].mxu0 }
 0x400   : > { %v2312_v26 = vmul.f32 %v2291_v23, %v2112_v27  ;;  %v2958_v21 = vpop.f32.mrb[49].mxu0 }
 0x401   : > { %v2115_v25 = vpop.f32.mrb[50].mxu0 }
 0x402   : > { %v2329_v35 = vsel %vm624_vm2, %v2312_v26, 0.0  ;;  %v2959_v62 = vpop.f32.mrb[51].mxu0  ;;  %v2158_v1 = vpop.f32.mrb[48].mxu1 }
 0x403   : > { %v2330_v41 = vadd.f32 %v2329_v35, %v2328_v14  ;;  %v2964_v34 = vpop.f32.mrb[49].mxu1  ;;  %v2313_v3 = vmul.f32 %v2295_v56, %v2158_v1 }
 0x404   : > { %v2161_v43 = vpop.f32.mrb[50].mxu1 }
 0x405   : > { %v2338_v44 = vpack.c.bf16 %v2330_v41, %v2330_v41  ;;  %v2965_v36 = vpop.f32.mrb[51].mxu1  ;;  %v2331_v11 = vsel %vm624_vm2, %v2313_v3, 0.0  ;;  %v2729_v43 = vld [vmem:[%s4099_s7] ss:$0 sm:$0xff] }
 0x407   : > { %v2204_v54 = vpop.f32.mrb[52].mxu0  ;;  %2993 = vmatmul.mubr.msk.bf16.vlgmr.msra.gmra.mrb[60].mxu0 %vm624_vm2, %v2338_v44 }
 0x408   : > { %v2314_v2 = vmul.f32 %v2299_v48, %v2204_v54  ;;  %v2970_v51 = vpop.f32.mrb[53].mxu0 }
 0x409   : > { %v2207_v8 = vpop.f32.mrb[54].mxu0 }
 0x40a   : > { %v2332_v53 = vsel %vm624_vm2, %v2314_v2, 0.0  ;;  %v2971_v28 = vpop.f32.mrb[55].mxu0  ;;  %v2250_v52 = vpop.f32.mrb[52].mxu1 }
 0x40b   : > { %v2333_v13 = vadd.f32 %v2332_v53, %v2331_v11  ;;  %v2315_v59 = vmul.f32 %v2303_v58, %v2250_v52  ;;  %v2976_v30 = vpop.f32.mrb[53].mxu1 }
 0x40c   : > { %v2253_v24 = vpop.f32.mrb[54].mxu1 }
 0x40d   : > { %v2334_v60 = vsel %vm624_vm2, %v2315_v59, 0.0  ;;  %v2977_v33 = vpop.f32.mrb[55].mxu1 }
 0x40e   : > { %v2335_v61 = vadd.f32 %v2334_v60, %v2333_v13 }
 0x410   : > { %v2339_v63 = vpack.c.bf16 %v2335_v61, %v2335_v61 }
 0x412   : > { %2999 = vmatmul.mubr.msk.bf16.vlgmr.msra.gmra.mrb[60].mxu1 %vm624_vm2, %v2339_v63 }
 0x450   : > { %v1414_v0 = vpop.permute.xlu1 %1413 }
 0x451   : > { %v1417_v19 = vpop.permute.xlu0 %1416  ;;  %v1427_v47 = vrot.slane %v1414_v0, %v3787_v18 }
 0x452   : > { %v1431_v46 = vrot.slane %v1417_v19, %v3787_v18 }
 0x454   : > { %v1420_v20 = vpop.permute.xlu1 %1419  ;;  %v1440_v50 = vsel %vm1364_vm6, %v1431_v46, %v1427_v47 }
 0x455   : > { %v1435_v16 = vrot.slane %v1420_v20, %v3787_v18 }
 0x457   : > { %v1441_v17 = vsel %vm1366_vm7, %v1435_v16, %v1440_v50 }
 0x458   : > { %v1423_v29 = vpop.permute.xlu1 %1422 }
 0x459   : > { %v1439_v5 = vrot.slane %v1423_v29, %v3787_v18 }
 0x45b   : > { %v1442_v7 = vsel %vm1368_vm8, %v1439_v5, %v1441_v17 }
 0x45c   : > { %v1444_v57 = vsel %vm1371_vm9, %v1442_v7, 0.0 }
 0x45d   : > { %1445 = vadd.xlane.f32.xlu1 %v1444_v57 }
 0x4c1   : > { %v2384_v9 = vpop.f32.mrb[56].mxu0 }
 0x4c2   : > { %v2982_v4 = vpop.f32.mrb[57].mxu0  ;;  %v2528_v14 = vsel %vm408_vm1, %v2384_v9, 0.0 }
 0x4c3   : > { %v2387_v31 = vpop.f32.mrb[58].mxu0 }
 0x4c4   : > { %v2983_v40 = vpop.f32.mrb[59].mxu0 }
 0x4cd   : > { %v2430_v22 = vpop.f32.mrb[56].mxu1 }
 0x4ce   : > { %v2529_v23 = vsel %vm408_vm1, %v2430_v22, 0.0  ;;  %v2988_v27 = vpop.f32.mrb[57].mxu1 }
 0x4cf   : > { %v2530_v26 = vadd.f32 %v2529_v23, %v2528_v14  ;;  %v2433_v21 = vpop.f32.mrb[58].mxu1 }
 0x4d0   : > { %v2989_v42 = vpop.f32.mrb[59].mxu1 }
 0x4da   : > { %v2476_v25 = vpop.f32.mrb[60].mxu0 }
 0x4db   : > { %v2531_v35 = vsel %vm408_vm1, %v2476_v25, 0.0  ;;  %v2994_v62 = vpop.f32.mrb[61].mxu0 }
 0x4dc   : > { %v2532_v1 = vadd.f32 %v2531_v35, %v2530_v26  ;;  %v2479_v39 = vpop.f32.mrb[62].mxu0 }
 0x4dd   : > { %v2995_v41 = vpop.f32.mrb[63].mxu0 }
 0x4e5   : > { %v2522_v34 = vpop.f32.mrb[60].mxu1 }
 0x4e6   : > { %v2533_v56 = vsel %vm408_vm1, %v2522_v34, 0.0  ;;  %v3000_v44 = vpop.f32.mrb[61].mxu1 }
 0x4e7   : > { %v2534_v36 = vadd.f32 %v2533_v56, %v2532_v1  ;;  %v2525_v38 = vpop.f32.mrb[62].mxu1 }
 0x4e8   : > { %v3001_v3 = vpop.f32.mrb[63].mxu1 }
 0x4e9   : > { %v2542_v48 = vadd.f32 %v2729_v43, %v2534_v36 }
 0x4ea   : > { %v1446_v54 = vpop.xlane.xlu1 %1445 }
 0x4eb   : > { %v1451_v2 = vrot.slane %v1446_v54, %v3602_v55  ;;  %v1455_v51 = vrot.slane %v1446_v54, %v1382_v15  ;;  %2543 = vst.msk [vmem:[%s351_s21] sm:$0xff] %vm408_vm1, %v2542_v48  ;;  %v1459_v8 = vrot.slane %v1446_v54, %v1386_v45  ;;  %v1463_v58 = vrot.slane %v1446_v54, %v1390_v32 }
 0x4ed   : > { %3143 = vrcp.f32 %v1451_v2 }
 0x4ee   : > { %3145 = vrcp.f32 %v1455_v51 }
 0x4ef   : > { %3147 = vrcp.f32 %v1459_v8 }
 0x4f0   : > { %3149 = vrcp.f32 %v1463_v58 }
 0x4f7   : > { %v3144_v11 = vpop.eup %3143 }
 0x4f8   : > { %v1469_v55 = vmul.f32 %v3144_v11, %v3907_v6  ;;  %v3146_v53 = vpop.eup %3145 }
 0x4f9   : > { %v1471_v15 = vmul.f32 %v3146_v53, %v3913_v10  ;;  %v3148_v28 = vpop.eup %3147 }
 0x4fa   : > { %1481 = vperm.xlu0 %3046, %v1469_v55   ;;  %v1473_v45 = vmul.f32 %v3148_v28, %v3920_v12  ;;  %v3150_v52 = vpop.eup %3149 }
 0x4fb   : > { %v1475_v37 = vmul.f32 %v3150_v52, %v3929_v49 }
 0x4fe   : > { %1484 = vperm.xlu0 %3046, %v1471_v15  }
 0x502   : > { %1487 = vperm.xlu0 %3046, %v1473_v45  }
 0x506   : > { %1490 = vperm.xlu0 %3046, %v1475_v37  }
 0x507   : > { %3164 = shalt.err (!%p3161_p3)
}
 0x508   : > { %s3165_s17 = scalar_lea.hbm %s4041_s29, 128  ;;  %s3169_s20 = scalar_lea.hbm %s4100_s8, 256 }
 0x509   : > { %p3166_p4 = scmp.ne.s32.totalorder %s4041_s29, %s3165_s17  ;;  %p3170_p9 = scmp.lt.u32.totalorder %s4041_s29, %s4100_s8 }
 0x50a   : > { %p3171_p10 = scmp.lt.u32.totalorder %s3169_s20, %s3165_s17  ;;  %p3173_p12 = scmp.lt.u32.totalorder %s3165_s17, %s4041_s29 }
 0x50b   : > { %p3167_p7 = pnand %p3166_p4, %p3312_p5 }
 0x50c   : > { %p3172_p11 = por %p3171_p10, %p3170_p9 }
 0x50d   : > { %p3168_p8 = pneg %p3167_p7 }
 0x50e   : > { %p3174_p13 = por %p3173_p12, %p3172_p11 }
 0x510   : > { %p3175_p0 = pnand %p3174_p13, %p3168_p8 }
 0x512   : > { %3178 = shalt.err (!%p3175_p0)
}
 0x513   : > { %3003 = dma.vmem_to_hbm [thread:$0]  (%p3312_p5), %s2568_s12, 128, %s4041_s29, %s2545_s18  }
 0x514   : > { %s4110_s1 = sshll.u32 %s3340_s11, 2 }
 0x515   : > { %s372_s26 = scalar_lea.vmem %s4101_s9, %s4110_s1 }
 0x579   : > { %v1482_v32 = vpop.permute.xlu0 %1481 }
 0x57a   : > { %v1495_v13 = vrot.slane %v1482_v32, %v3787_v18 }
 0x57d   : > { %v1485_v6 = vpop.permute.xlu0 %1484 }
 0x57e   : > { %v1499_v12 = vrot.slane %v1485_v6, %v3787_v18 }
 0x580   : > { %v1508_v30 = vsel %vm1364_vm6, %v1499_v12, %v1495_v13 }
 0x581   : > { %v1488_v10 = vpop.permute.xlu0 %1487 }
 0x582   : > { %v1503_v49 = vrot.slane %v1488_v10, %v3787_v18 }
 0x584   : > { %v1509_v60 = vsel %vm1366_vm7, %v1503_v49, %v1508_v30 }
 0x585   : > { %v1491_v59 = vpop.permute.xlu0 %1490 }
 0x586   : > { %v1507_v24 = vrot.slane %v1491_v59, %v3787_v18 }
 0x588   : > { %v1510_v33 = vsel %vm1368_vm8, %v1507_v24, %v1509_v60 }
 0x589   : > { %1512 = vst.msk [vmem:[%s372_s26] sm:$0xf] %vm1371_vm9, %v1510_v33 }
 0x58a PF: > { %p3009_p5 = scmp.ge.s32.totalorder %s3213_s16, 2  ;;  %s2585_s23 = sand.u32 1, %s3201_s13  }
 0x58b   : > { %s2586_s11 = scalar_lea.sflag [#allocation3], %s2585_s23 }
 0x58c   : > { %p3006_p1 = pnand %p3009_p5, %p3316_p6 }
 0x58e   : > { %3196 = dma.done.wait (!%p3006_p1), %s2586_s11, 128  }
 0x58f   : > { %3198 = vsyncadd (!%p3006_p1), %s2586_s11, 4294967168  ;;  %p21_p2 = scmp.ge.s32.totalorder %s3299_s19, 4   ;;  %s4111_s13 = smov %s3205_s14 }
 0x590   : > { %s4112_s14 = smov %s3209_s15  ;;  %s4113_s15 = smov %s3310_s22 }
 0x591   : > { %s4114_s16 = smov %s3299_s19  ;;  %23 = sbr.rel (!%p21_p2) target bundleno = 6 (0x6), region = 111 }
 0x598   :  { %2606 = vsyncpa [#allocation3], 1 }
 0x599   :  { %2608 = vsyncpa [#allocation3 + $0x1], 1 }

</bundles_post_ra>
